<compile_context>
chip_gen: v5e
topology: v5e:2x2
jax: 0.10.0
libtpu: 0.0.40
codegen_flags: <defaults>
</compile_context>

<pallas_src>
import jax
import jax.numpy as jnp
from jax.experimental import pallas as pl
from jax.experimental.pallas import tpu as pltpu

Y_DIM = 3
HIDDEN = 40 * 9          # 360 (logical width, matches the torch module)
HIDDEN_PAD = 384         # padded to a multiple of 128 lanes
OUT_PAD = 128            # lane-dense output block; wrapper slices [:, :Y_DIM]


def _gelu_exact(x):
    # torch.nn.GELU() default: 0.5 * x * (1 + erf(x / sqrt(2)))
    return 0.5 * x * (1.0 + jax.lax.erf(x * 0.7071067811865476))


def _mlp_kernel(y_ref,
                w1_ref, b1_ref,
                w2_ref, b2_ref,
                w3_ref, b3_ref,
                w4_ref, b4_ref,
                o_ref):
    x = y_ref[...].astype(jnp.float32)                                    # (tb, 3)

    # Layer 1: K=3 contraction as three VPU broadcast-FMAs (no MXU pass).
    h = (x[:, 0:1] * w1_ref[0:1, :]
         + x[:, 1:2] * w1_ref[1:2, :]
         + x[:, 2:3] * w1_ref[2:3, :]
         + b1_ref[...])                                                   # (tb, 384)
    h = _gelu_exact(h)

    # Layers 2/3: lane-dense 384x384 MXU matmuls, f32 accumulation.
    h = jnp.dot(h, w2_ref[...], preferred_element_type=jnp.float32) + b2_ref[...]
    h = _gelu_exact(h)

    h = jnp.dot(h, w3_ref[...], preferred_element_type=jnp.float32) + b3_ref[...]
    h = _gelu_exact(h)

    # Output layer: (tb, 384) @ (384, 128) + b4  -> unmasked, lane-dense store.
    out = jnp.dot(h, w4_ref[...], preferred_element_type=jnp.float32) + b4_ref[...]
    o_ref[...] = out.astype(o_ref.dtype)


def _default_tile_b(B):
    # Small batches: one block (minimal grid-step overhead; avoid duplicating
    # the weight DMA across cores in the HBM-bound regime).
    # Large batches: prefer 256 rows (matches v6e/v7x 256-wide MXU, modest
    # live-activation footprint), then 128 (v5e MXU width), 512 as fallback.
    if B >= 256:
        for cand in (256, 128, 512):
            if B % cand == 0 and B // cand >= 2:
                return cand
    return B


def pad_params(params):
    """Zero-pad HIDDEN (360) to HIDDEN_PAD (384) and the output dim (3) to
    OUT_PAD (128).  Exact: gelu(0)=0 and padded rows/cols/biases are zero, so
    the first 3 output columns equal the unpadded result up to f32 rounding.
    Pad once, reuse across the thousands of RHS evaluations an integrator makes."""
    (w1, b1), (w2, b2), (w3, b3), (w4, b4) = params
    ph = HIDDEN_PAD - HIDDEN
    po = OUT_PAD - Y_DIM
    w1p = jnp.pad(w1, ((0, 0), (0, ph)))
    b1p = jnp.pad(b1, ((0, 0), (0, ph)))
    w2p = jnp.pad(w2, ((0, ph), (0, ph)))
    b2p = jnp.pad(b2, ((0, 0), (0, ph)))
    w3p = jnp.pad(w3, ((0, ph), (0, ph)))
    b3p = jnp.pad(b3, ((0, 0), (0, ph)))
    w4p = jnp.pad(w4, ((0, ph), (0, po)))
    b4p = jnp.pad(b4, ((0, 0), (0, po)))
    return (w1p, b1p), (w2p, b2p), (w3p, b3p), (w4p, b4p)


def ode_func_lorenz_periodic(t, y, padded_params, *, tile_b=None):
    """Pallas implementation of ODEFunc_Lorenz_periodic.forward(t, y).

    `padded_params` must come from pad_params(...).

    y may have shape (..., 3); all leading dims (RK stages, trajectories,
    batch) are flattened and evaluated in a SINGLE pallas_call so the resident
    weights are DMA'd from HBM only once per call.
    """
    del t  # t is unused by the module's forward
    (w1, b1), (w2, b2), (w3, b3), (w4, b4) = padded_params
    orig_shape = y.shape
    assert orig_shape[-1] == Y_DIM
    y2 = y.reshape(-1, Y_DIM)
    B = y2.shape[0]
    HP = w2.shape[0]
    OP = w4.shape[1]

    if tile_b is None:
        tile_b = _default_tile_b(B)
    assert B % tile_b == 0
    grid = (B // tile_b,)

    resident = lambda shape: pl.BlockSpec(shape, lambda i: (0, 0))

    # Advisory cost estimate (logical, unpadded FLOPs / padded bytes).
    flops = 2 * B * (Y_DIM * HIDDEN + 2 * HIDDEN * HIDDEN + HIDDEN * Y_DIM)
    transcendentals = 3 * B * HIDDEN  # one erf per hidden activation
    bytes_accessed = 4 * (B * Y_DIM + B * OP
                          + Y_DIM * HP + 2 * HP * HP + HP * OP
                          + 3 * HP + OP)
    cost = pl.CostEstimate(flops=flops,
                           transcendentals=transcendentals,
                           bytes_accessed=bytes_accessed)

    out_full = pl.pallas_call(
        _mlp_kernel,
        out_shape=jax.ShapeDtypeStruct((B, OP), y.dtype),
        grid_spec=pltpu.PrefetchScalarGridSpec(
            num_scalar_prefetch=0,
            grid=grid,
            in_specs=[
                pl.BlockSpec((tile_b, Y_DIM), lambda i: (i, 0)),   # y tile
                resident((Y_DIM, HP)),  resident((1, HP)),         # W1, b1
                resident((HP, HP)),     resident((1, HP)),         # W2, b2
                resident((HP, HP)),     resident((1, HP)),         # W3, b3
                resident((HP, OP)),     resident((1, OP)),         # W4, b4
            ],
            out_specs=pl.BlockSpec((tile_b, OP), lambda i: (i, 0)),
        ),
        compiler_params=pltpu.CompilerParams(
            dimension_semantics=("parallel",),
        ),
        cost_estimate=cost,
    )(y2, w1, b1, w2, b2, w3, b3, w4, b4)

    # Slice away the zero output-padding columns and restore leading dims.
    return out_full[:, :Y_DIM].reshape(orig_shape)


def init_params(key, dtype=jnp.float32):
    """Deterministic synthetic parameters, torch-Linear-shaped but stored as (in, out)."""
    dims = [(Y_DIM, HIDDEN), (HIDDEN, HIDDEN), (HIDDEN, HIDDEN), (HIDDEN, Y_DIM)]
    params = []
    for (fan_in, fan_out) in dims:
        key, kw, kb = jax.random.split(key, 3)
        bound = 1.0 / jnp.sqrt(fan_in)  # matches torch Linear uniform bound
        w = jax.random.uniform(kw, (fan_in, fan_out), dtype, -bound, bound)
        b = jax.random.uniform(kb, (1, fan_out), dtype, -bound, bound)
        params.append((w, b))
    return params


def _reference(y, params):
    (w1, b1), (w2, b2), (w3, b3), (w4, b4) = params
    h = jax.nn.gelu(y @ w1 + b1, approximate=False)
    h = jax.nn.gelu(h @ w2 + b2, approximate=False)
    h = jax.nn.gelu(h @ w3 + b3, approximate=False)
    return h @ w4 + b4


if __name__ == "__main__":
    key = jax.random.PRNGKey(0)
    kp, ky = jax.random.split(key)

    params = init_params(kp)
    padded = pad_params(params)     # pad once, reuse for every RHS evaluation

    batch = 16
    y = jax.random.normal(ky, (batch, Y_DIM), jnp.float32)
    t = jnp.float32(0.0)            # unused, kept for API parity with the torch module

    out = ode_func_lorenz_periodic(t, y, padded)
    out = jax.block_until_ready(out)

    ref = _reference(y, params)
    assert out.shape == (batch, Y_DIM)
    assert jnp.allclose(out, ref, atol=1e-4, rtol=1e-4)

    print("KERNEL_OK")
</pallas_src>

<mosaic_0001>
module attributes {stable_mosaic.version = 11 : i64} {
  func.func @_mlp_kernel(%arg0: i32, %arg1: memref<16x3xf32, #tpu.memory_space<vmem>>, %arg2: memref<3x384xf32, #tpu.memory_space<vmem>>, %arg3: memref<1x384xf32, #tpu.memory_space<vmem>>, %arg4: memref<384x384xf32, #tpu.memory_space<vmem>>, %arg5: memref<1x384xf32, #tpu.memory_space<vmem>>, %arg6: memref<384x384xf32, #tpu.memory_space<vmem>>, %arg7: memref<1x384xf32, #tpu.memory_space<vmem>>, %arg8: memref<384x128xf32, #tpu.memory_space<vmem>>, %arg9: memref<1x128xf32, #tpu.memory_space<vmem>>, %arg10: memref<16x128xf32, #tpu.memory_space<vmem>>) attributes {dimension_semantics = [#tpu.dimension_semantics<parallel>], iteration_bounds = array<i64: 1>, scalar_prefetch = 0 : i64, scratch_operands = 0 : i64, tpu.core_type = #tpu.core_type<tc>, window_params = [{transform_indices = @transform_0, window_bounds = array<i64: 16, 3>}, {pipeline_mode = #tpu.pipeline_mode<synchronous>, transform_indices = @transform_1, window_bounds = array<i64: 3, 384>}, {pipeline_mode = #tpu.pipeline_mode<synchronous>, transform_indices = @transform_2, window_bounds = array<i64: 1, 384>}, {pipeline_mode = #tpu.pipeline_mode<synchronous>, transform_indices = @transform_3, window_bounds = array<i64: 384, 384>}, {pipeline_mode = #tpu.pipeline_mode<synchronous>, transform_indices = @transform_4, window_bounds = array<i64: 1, 384>}, {pipeline_mode = #tpu.pipeline_mode<synchronous>, transform_indices = @transform_5, window_bounds = array<i64: 384, 384>}, {pipeline_mode = #tpu.pipeline_mode<synchronous>, transform_indices = @transform_6, window_bounds = array<i64: 1, 384>}, {pipeline_mode = #tpu.pipeline_mode<synchronous>, transform_indices = @transform_7, window_bounds = array<i64: 384, 128>}, {pipeline_mode = #tpu.pipeline_mode<synchronous>, transform_indices = @transform_8, window_bounds = array<i64: 1, 128>}, {transform_indices = @transform_9, window_bounds = array<i64: 16, 128>}]} {
    %c0 = arith.constant 0 : index
    %c0_0 = arith.constant 0 : index
    %0 = vector.load %arg1[%c0, %c0_0] : memref<16x3xf32, #tpu.memory_space<vmem>>, vector<16x3xf32>
    %1 = vector.extract_strided_slice %0 {offsets = [0, 0], sizes = [16, 1], strides = [1, 1]} : vector<16x3xf32> to vector<16x1xf32>
    %c0_1 = arith.constant 0 : index
    %c0_2 = arith.constant 0 : index
    %2 = vector.load %arg2[%c0_1, %c0_2] : memref<3x384xf32, #tpu.memory_space<vmem>>, vector<1x384xf32>
    %3 = vector.broadcast %1 : vector<16x1xf32> to vector<16x384xf32>
    %4 = vector.broadcast %2 : vector<1x384xf32> to vector<16x384xf32>
    %5 = arith.mulf %3, %4 : vector<16x384xf32>
    %6 = vector.extract_strided_slice %0 {offsets = [0, 1], sizes = [16, 1], strides = [1, 1]} : vector<16x3xf32> to vector<16x1xf32>
    %c1 = arith.constant 1 : index
    %c0_3 = arith.constant 0 : index
    %7 = vector.load %arg2[%c1, %c0_3] : memref<3x384xf32, #tpu.memory_space<vmem>>, vector<1x384xf32>
    %8 = vector.broadcast %6 : vector<16x1xf32> to vector<16x384xf32>
    %9 = vector.broadcast %7 : vector<1x384xf32> to vector<16x384xf32>
    %10 = arith.mulf %8, %9 : vector<16x384xf32>
    %11 = arith.addf %5, %10 : vector<16x384xf32>
    %12 = vector.extract_strided_slice %0 {offsets = [0, 2], sizes = [16, 1], strides = [1, 1]} : vector<16x3xf32> to vector<16x1xf32>
    %c2 = arith.constant 2 : index
    %c0_4 = arith.constant 0 : index
    %13 = vector.load %arg2[%c2, %c0_4] : memref<3x384xf32, #tpu.memory_space<vmem>>, vector<1x384xf32>
    %14 = vector.broadcast %12 : vector<16x1xf32> to vector<16x384xf32>
    %15 = vector.broadcast %13 : vector<1x384xf32> to vector<16x384xf32>
    %16 = arith.mulf %14, %15 : vector<16x384xf32>
    %17 = arith.addf %11, %16 : vector<16x384xf32>
    %c0_5 = arith.constant 0 : index
    %c0_6 = arith.constant 0 : index
    %18 = vector.load %arg3[%c0_5, %c0_6] : memref<1x384xf32, #tpu.memory_space<vmem>>, vector<1x384xf32>
    %19 = vector.broadcast %18 : vector<1x384xf32> to vector<16x384xf32>
    %20 = arith.addf %17, %19 : vector<16x384xf32>
    %cst = arith.constant 5.000000e-01 : f32
    %21 = vector.broadcast %cst : f32 to vector<16x384xf32>
    %22 = arith.mulf %21, %20 : vector<16x384xf32>
    %cst_7 = arith.constant 0.707106769 : f32
    %23 = vector.broadcast %cst_7 : f32 to vector<16x384xf32>
    %24 = arith.mulf %20, %23 : vector<16x384xf32>
    %25 = math.erf %24 : vector<16x384xf32>
    %cst_8 = arith.constant 1.000000e+00 : f32
    %26 = vector.broadcast %cst_8 : f32 to vector<16x384xf32>
    %27 = arith.addf %26, %25 : vector<16x384xf32>
    %28 = arith.mulf %22, %27 : vector<16x384xf32>
    %c0_9 = arith.constant 0 : index
    %c0_10 = arith.constant 0 : index
    %29 = vector.load %arg4[%c0_9, %c0_10] : memref<384x384xf32, #tpu.memory_space<vmem>>, vector<384x384xf32>
    %cst_11 = arith.constant dense<0.000000e+00> : vector<16x384xf32>
    %30 = tpu.matmul %28, %29, %cst_11 {dimension_numbers = #tpu.dot_dimension_numbers<[1], [0], [0], [1], [0, 0, 1, 1], [], []>} : vector<16x384xf32>, vector<384x384xf32>, vector<16x384xf32> -> vector<16x384xf32>
    %c0_12 = arith.constant 0 : index
    %c0_13 = arith.constant 0 : index
    %31 = vector.load %arg5[%c0_12, %c0_13] : memref<1x384xf32, #tpu.memory_space<vmem>>, vector<1x384xf32>
    %32 = vector.broadcast %31 : vector<1x384xf32> to vector<16x384xf32>
    %33 = arith.addf %30, %32 : vector<16x384xf32>
    %cst_14 = arith.constant 5.000000e-01 : f32
    %34 = vector.broadcast %cst_14 : f32 to vector<16x384xf32>
    %35 = arith.mulf %34, %33 : vector<16x384xf32>
    %cst_15 = arith.constant 0.707106769 : f32
    %36 = vector.broadcast %cst_15 : f32 to vector<16x384xf32>
    %37 = arith.mulf %33, %36 : vector<16x384xf32>
    %38 = math.erf %37 : vector<16x384xf32>
    %cst_16 = arith.constant 1.000000e+00 : f32
    %39 = vector.broadcast %cst_16 : f32 to vector<16x384xf32>
    %40 = arith.addf %39, %38 : vector<16x384xf32>
    %41 = arith.mulf %35, %40 : vector<16x384xf32>
    %c0_17 = arith.constant 0 : index
    %c0_18 = arith.constant 0 : index
    %42 = vector.load %arg6[%c0_17, %c0_18] : memref<384x384xf32, #tpu.memory_space<vmem>>, vector<384x384xf32>
    %cst_19 = arith.constant dense<0.000000e+00> : vector<16x384xf32>
    %43 = tpu.matmul %41, %42, %cst_19 {dimension_numbers = #tpu.dot_dimension_numbers<[1], [0], [0], [1], [0, 0, 1, 1], [], []>} : vector<16x384xf32>, vector<384x384xf32>, vector<16x384xf32> -> vector<16x384xf32>
    %c0_20 = arith.constant 0 : index
    %c0_21 = arith.constant 0 : index
    %44 = vector.load %arg7[%c0_20, %c0_21] : memref<1x384xf32, #tpu.memory_space<vmem>>, vector<1x384xf32>
    %45 = vector.broadcast %44 : vector<1x384xf32> to vector<16x384xf32>
    %46 = arith.addf %43, %45 : vector<16x384xf32>
    %cst_22 = arith.constant 5.000000e-01 : f32
    %47 = vector.broadcast %cst_22 : f32 to vector<16x384xf32>
    %48 = arith.mulf %47, %46 : vector<16x384xf32>
    %cst_23 = arith.constant 0.707106769 : f32
    %49 = vector.broadcast %cst_23 : f32 to vector<16x384xf32>
    %50 = arith.mulf %46, %49 : vector<16x384xf32>
    %51 = math.erf %50 : vector<16x384xf32>
    %cst_24 = arith.constant 1.000000e+00 : f32
    %52 = vector.broadcast %cst_24 : f32 to vector<16x384xf32>
    %53 = arith.addf %52, %51 : vector<16x384xf32>
    %54 = arith.mulf %48, %53 : vector<16x384xf32>
    %c0_25 = arith.constant 0 : index
    %c0_26 = arith.constant 0 : index
    %55 = vector.load %arg8[%c0_25, %c0_26] : memref<384x128xf32, #tpu.memory_space<vmem>>, vector<384x128xf32>
    %cst_27 = arith.constant dense<0.000000e+00> : vector<16x128xf32>
    %56 = tpu.matmul %54, %55, %cst_27 {dimension_numbers = #tpu.dot_dimension_numbers<[1], [0], [0], [1], [0, 0, 1, 1], [], []>} : vector<16x384xf32>, vector<384x128xf32>, vector<16x128xf32> -> vector<16x128xf32>
    %c0_28 = arith.constant 0 : index
    %c0_29 = arith.constant 0 : index
    %57 = vector.load %arg9[%c0_28, %c0_29] : memref<1x128xf32, #tpu.memory_space<vmem>>, vector<1x128xf32>
    %58 = vector.broadcast %57 : vector<1x128xf32> to vector<16x128xf32>
    %59 = arith.addf %56, %58 : vector<16x128xf32>
    %c0_30 = arith.constant 0 : index
    %c0_31 = arith.constant 0 : index
    %60 = vector.load %arg10[%c0_30, %c0_31] : memref<16x128xf32, #tpu.memory_space<vmem>>, vector<16x128xf32>
    tpu.vector_store %arg10[%c0_30, %c0_31], %59 {strides = array<i32>} : memref<16x128xf32, #tpu.memory_space<vmem>>, vector<16x128xf32>,
    return
  }
  func.func @transform_0(%arg0: i32) -> (i32, i32) {
    %c0_i32 = arith.constant 0 : i32
    %c0_i32_0 = arith.constant 0 : i32
    return %arg0, %c0_i32 : i32, i32
  }
  func.func @transform_1(%arg0: i32) -> (i32, i32) {
    %c0_i32 = arith.constant 0 : i32
    %c0_i32_0 = arith.constant 0 : i32
    %c0_i32_1 = arith.constant 0 : i32
    return %c0_i32, %c0_i32_0 : i32, i32
  }
  func.func @transform_2(%arg0: i32) -> (i32, i32) {
    %c0_i32 = arith.constant 0 : i32
    %c0_i32_0 = arith.constant 0 : i32
    %c0_i32_1 = arith.constant 0 : i32
    return %c0_i32, %c0_i32_0 : i32, i32
  }
  func.func @transform_3(%arg0: i32) -> (i32, i32) {
    %c0_i32 = arith.constant 0 : i32
    %c0_i32_0 = arith.constant 0 : i32
    %c0_i32_1 = arith.constant 0 : i32
    return %c0_i32, %c0_i32_0 : i32, i32
  }
  func.func @transform_4(%arg0: i32) -> (i32, i32) {
    %c0_i32 = arith.constant 0 : i32
    %c0_i32_0 = arith.constant 0 : i32
    %c0_i32_1 = arith.constant 0 : i32
    return %c0_i32, %c0_i32_0 : i32, i32
  }
  func.func @transform_5(%arg0: i32) -> (i32, i32) {
    %c0_i32 = arith.constant 0 : i32
    %c0_i32_0 = arith.constant 0 : i32
    %c0_i32_1 = arith.constant 0 : i32
    return %c0_i32, %c0_i32_0 : i32, i32
  }
  func.func @transform_6(%arg0: i32) -> (i32, i32) {
    %c0_i32 = arith.constant 0 : i32
    %c0_i32_0 = arith.constant 0 : i32
    %c0_i32_1 = arith.constant 0 : i32
    return %c0_i32, %c0_i32_0 : i32, i32
  }
  func.func @transform_7(%arg0: i32) -> (i32, i32) {
    %c0_i32 = arith.constant 0 : i32
    %c0_i32_0 = arith.constant 0 : i32
    %c0_i32_1 = arith.constant 0 : i32
    return %c0_i32, %c0_i32_0 : i32, i32
  }
  func.func @transform_8(%arg0: i32) -> (i32, i32) {
    %c0_i32 = arith.constant 0 : i32
    %c0_i32_0 = arith.constant 0 : i32
    %c0_i32_1 = arith.constant 0 : i32
    return %c0_i32, %c0_i32_0 : i32, i32
  }
  func.func @transform_9(%arg0: i32) -> (i32, i32) {
    %c0_i32 = arith.constant 0 : i32
    %c0_i32_0 = arith.constant 0 : i32
    return %arg0, %c0_i32 : i32, i32
  }
}

</mosaic_0001>

<bundles_post_ra>
// kernel: tpu_custom_call.1
= control target key start
LH: loop header
LB: loop body
LE: loop exit
PB: predicated region body
PF: predicated region fallthrough
CT: control target
= control target key end

     0   :  { %14 = vsyncpa [#allocation3], 0  ;;  %s2885_s0 = inlined_call_operand.vmem [shape: f32[16,3], index: 0, kind: input, shape index: {}]   ;;  %s2886_s1 = inlined_call_operand.vmem [shape: f32[3,384], index: 1, kind: input, shape index: {}]   ;;  %s2887_s2 = inlined_call_operand.vmem [shape: f32[1,384], index: 2, kind: input, shape index: {}]   ;;  %s2888_s3 = inlined_call_operand.hbm [shape: f32[384,384], index: 3, kind: input, shape index: {}]   ;;  %s2889_s4 = inlined_call_operand.vmem [shape: f32[1,384], index: 4, kind: input, shape index: {}]   ;;  %s2890_s5 = inlined_call_operand.hbm [shape: f32[384,384], index: 5, kind: input, shape index: {}]   ;;  %s2891_s6 = inlined_call_operand.vmem [shape: f32[1,384], index: 6, kind: input, shape index: {}]   ;;  %s2892_s7 = inlined_call_operand.hbm [shape: f32[384,128], index: 7, kind: input, shape index: {}]   ;;  %s2893_s8 = inlined_call_operand.vmem [shape: f32[1,128], index: 8, kind: input, shape index: {}]   ;;  %s2894_s9 = inlined_call_operand.hbm [shape: f32[16,128], index: 9, kind: output, shape index: {}]  }
   0x1   :  { %15 = vsyncpa [#allocation6], 0 }
   0x2   :  { %16 = vsyncpa [#allocation4], 0  ;;  %s42_s11 = sshll.u32 %s2890_s5, 4  ;;  %s2024_s12 = smov [#allocation5]   ;;  %s43_s11 = int_to_ptr.hbm [resolvable:$true] %s42_s11 }
   0x3   :  { %s44_s13 = sshll.u32 %s2024_s12, 4  ;;  %s27_s16 = sshll.u32 %s2888_s3, 4  ;;  %s45_s13 = int_to_ptr.vmem [resolvable:$true] %s44_s13  ;;  %s28_s16 = int_to_ptr.hbm [resolvable:$true] %s27_s16 }
   0x4   :  { %s2025_s17 = smov 384   ;;  %s2026_s18 = smov 24  }
   0x5   :  { %50 = dma.hbm_to_vmem [thread:$0]  %s43_s11, 18432, %s45_s13, [#allocation6], %s2025_s17, %s2025_s17, %s2026_s18  }
   0x6   :  { %s2027_s19 = smov [#allocation2]   ;;  %s57_s23 = sshll.u32 %s2892_s7, 4  ;;  %s58_s23 = int_to_ptr.hbm [resolvable:$true] %s57_s23 }
   0x7   :  { %s29_s20 = sshll.u32 %s2027_s19, 4  ;;  %s2028_s5 = smov [#allocation7]   ;;  %s30_s20 = int_to_ptr.vmem [resolvable:$true] %s29_s20 }
   0x8   :  { %35 = dma.hbm_to_vmem [thread:$0]  %s28_s16, 18432, %s30_s20, [#allocation3], %s2025_s17, %s2025_s17, %s2026_s18  }
   0x9   :  { %s59_s24 = sshll.u32 %s2028_s5, 4  ;;  %s2029_s25 = smov 128   ;;  %s60_s24 = int_to_ptr.vmem [resolvable:$true] %s59_s24 }
   0xa   :  { %s2030_s26 = smov 8  }
   0xb   :  { %65 = dma.hbm_to_vmem [thread:$0]  %s58_s23, 6144, %s60_s24, [#allocation6], %s2029_s25, %s2029_s25, %s2030_s26  }
   0xc   :  { %2018 = dma.done.wait [#allocation3], 18432  }
   0xd   :  { %2019 = vsyncadd [#allocation3], 4294948864 }
   0xe   :  { %2020 = dma.done.wait [#allocation6], 24576  }
   0xf   :  { %2021 = vsyncadd [#allocation6], 4294942720  ;;  %v2031_v0 = vmov 2   ;;  %v2032_v1 = vmov 0   ;;  %v2033_v2 = vmov 1   ;;  %v80_v3 = vld [vmem:[%s2885_s0] sm:$0xff] }
  0x10   :  { %1880 = vset.pattern.permute.xlu1 %v2031_v0  ;;  %1878 = vset.pattern.permute.xlu0 %v2032_v1  ;;  %v81_v4 = vld [vmem:[%s2885_s0 + $0x8] sm:$0xff]  ;;  %v484_v6 = vld [vmem:[#allocation2 + $0x150] sm:$0xff]  ;;  %v481_v7 = vld [vmem:[#allocation2 + $0x138] sm:$0xff]  ;;  %s2034_s17 = smov [#allocation8]   ;;  %s1817_s21 = sshll.u32 %s2894_s9, 4  ;;  %s1818_s21 = int_to_ptr.hbm [resolvable:$true] %s1817_s21 }
  0x11   :  { %1882 = vset.pattern.permute.xlu2 %v2033_v2  ;;  %138 = vperm.xlu1 %1880, %v80_v3   ;;  %v487_v5 = vld [vmem:[#allocation2 + $0x168] sm:$0xff]  ;;  %v478_v8 = vld [vmem:[#allocation2 + $0x120] sm:$0xff]  ;;  %v472_v10 = vld [vmem:[#allocation2 + $0xf0] sm:$0xff]  ;;  %s1815_s18 = sshll.u32 %s2034_s17, 4  ;;  %s1816_s18 = int_to_ptr.vmem [resolvable:$true] %s1815_s18 }
  0x12   :  { %85 = vperm.xlu0 %1878, %v80_v3   ;;  %113 = vperm.xlu2 %1882, %v81_v4   ;;  %v475_v9 = vld [vmem:[#allocation2 + $0x108] sm:$0xff]  ;;  %v469_v11 = vld [vmem:[#allocation2 + $0xd8] sm:$0xff]  ;;  %v466_v12 = vld [vmem:[#allocation2 + $0xc0] sm:$0xff] }
  0x13   :  { %594 = vmatpush.msra.mxu0 %v487_v5  ;;  %v535_v13 = vld [vmem:[#allocation2 + $0x2e8] sm:$0xff]  ;;  %v488_v15 = vld [vmem:[#allocation2 + $0x170] sm:$0xff]  ;;  %v485_v19 = vld [vmem:[#allocation2 + $0x158] sm:$0xff] }
  0x14   :  { %v583_v14 = vld [vmem:[#allocation2 + $0x468] sm:$0xff]  ;;  %617 = vmatpush.msra.mxu1 %v535_v13  ;;  %v532_v17 = vld [vmem:[#allocation2 + $0x2d0] sm:$0xff]  ;;  %663 = vmatpush.msra.mxu3 %v488_v15  ;;  %v529_v21 = vld [vmem:[#allocation2 + $0x2b8] sm:$0xff] }
  0x15   :  { %595 = vmatpush.msra.mxu0 %v484_v6  ;;  %640 = vmatpush.msra.mxu2 %v583_v14  ;;  %v463_v16 = vld [vmem:[#allocation2 + $0xa8] sm:$0xff]  ;;  %v580_v18 = vld [vmem:[#allocation2 + $0x450] sm:$0xff]  ;;  %v577_v22 = vld [vmem:[#allocation2 + $0x438] sm:$0xff] }
  0x16   :  { %v460_v20 = vld [vmem:[#allocation2 + $0x90] sm:$0xff]  ;;  %618 = vmatpush.msra.mxu1 %v532_v17  ;;  %v482_v23 = vld [vmem:[#allocation2 + $0x140] sm:$0xff]  ;;  %v457_v24 = vld [vmem:[#allocation2 + $0x78] sm:$0xff]  ;;  %664 = vmatpush.msra.mxu3 %v485_v19 }
  0x17   :  { %596 = vmatpush.msra.mxu0 %v481_v7  ;;  %641 = vmatpush.msra.mxu2 %v580_v18  ;;  %v526_v25 = vld [vmem:[#allocation2 + $0x2a0] sm:$0xff]  ;;  %v479_v28 = vld [vmem:[#allocation2 + $0x128] sm:$0xff]  ;;  %v476_v32 = vld [vmem:[#allocation2 + $0x110] sm:$0xff] }
  0x18   :  { %v574_v26 = vld [vmem:[#allocation2 + $0x420] sm:$0xff]  ;;  %619 = vmatpush.msra.mxu1 %v529_v21  ;;  %665 = vmatpush.msra.mxu3 %v482_v23  ;;  %v523_v30 = vld [vmem:[#allocation2 + $0x288] sm:$0xff]  ;;  %v520_v34 = vld [vmem:[#allocation2 + $0x270] sm:$0xff] }
  0x19   :  { %1881 = vset.pattern.permute.xlu1 %v2032_v1  ;;  %597 = vmatpush.msra.mxu0 %v478_v8  ;;  %v454_v29 = vld [vmem:[#allocation2 + $0x60] sm:$0xff]  ;;  %v571_v31 = vld [vmem:[#allocation2 + $0x408] sm:$0xff]  ;;  %v568_v37 = vld [vmem:[#allocation2 + $0x3f0] sm:$0xff] }
  0x1a   :  { %1879 = vset.pattern.permute.xlu0 %v2033_v2  ;;  %90 = vperm.xlu1 %1881, %v81_v4   ;;  %v451_v33 = vld [vmem:[#allocation2 + $0x48] sm:$0xff]  ;;  %v473_v38 = vld [vmem:[#allocation2 + $0xf8] sm:$0xff]  ;;  %v448_v40 = vld [vmem:[#allocation2 + $0x30] sm:$0xff] }
  0x1b   :  { %109 = vperm.xlu0 %1879, %v80_v3   ;;  %1883 = vset.pattern.permute.xlu2 %v2031_v0  ;;  %v2112_v39 = vld [vmem:[%s2886_s1 + $0x1] ss:$4 sm:$0x7]  ;;  %v517_v41 = vld [vmem:[#allocation2 + $0x258] sm:$0xff]  ;;  %v464_v58 = vld [vmem:[#allocation2 + $0xb0] sm:$0xff] }
  0x1c   :  { %142 = vperm.xlu2 %1883, %v81_v4   ;;  %598 = vmatpush.msra.mxu0 %v475_v9  ;;  %v565_v42 = vld [vmem:[#allocation2 + $0x3d8] sm:$0xff]  ;;  %v470_v43 = vld [vmem:[#allocation2 + $0xe0] sm:$0xff]  ;;  %v117_v48 = vperm.slane %v2112_v39, 0  ;;  %v467_v50 = vld [vmem:[#allocation2 + $0xc8] sm:$0xff]  ;;  %v118_v61 = vperm.slane %v2112_v39, 1  ;;  %v119_v62 = vperm.slane %v2112_v39, 2 }
  0x1d   :  { %642 = vmatpush.msra.mxu2 %v577_v22  ;;  %620 = vmatpush.msra.mxu1 %v526_v25  ;;  %v2117_v44 = vld [vmem:[%s2886_s1] ss:$4 sm:$0x7]  ;;  %v445_v45 = vld [vmem:[#allocation2 + $0x18] sm:$0xff]  ;;  %v536_v63 = vld [vmem:[#allocation2 + $0x2f0] sm:$0xff] }
  0x1e   :  { %599 = vmatpush.msra.mxu0 %v472_v10  ;;  %666 = vmatpush.msra.mxu3 %v479_v28  ;;  %v514_v46 = vld [vmem:[#allocation2 + $0x240] sm:$0xff]  ;;  %v511_v52 = vld [vmem:[#allocation2 + $0x228] sm:$0xff]  ;;  %v94_v53 = vperm.slane %v2117_v44, 0  ;;  %v95_v54 = vperm.slane %v2117_v44, 1  ;;  %v96_v59 = vperm.slane %v2117_v44, 2  ;;  %v508_v2 = vld [vmem:[#allocation2 + $0x210] sm:$0xff] }
  0x1f   :  { %643 = vmatpush.msra.mxu2 %v574_v26  ;;  %621 = vmatpush.msra.mxu1 %v523_v30  ;;  %v2122_v47 = vld [vmem:[%s2886_s1 + $0x2] ss:$4 sm:$0x7]  ;;  %v556_v3 = vld [vmem:[#allocation2 + $0x390] sm:$0xff]  ;;  %v461_v9 = vld [vmem:[#allocation2 + $0x98] sm:$0xff] }
  0x20   :  { %600 = vmatpush.msra.mxu0 %v469_v11  ;;  %667 = vmatpush.msra.mxu3 %v476_v32  ;;  %v562_v49 = vld [vmem:[#allocation2 + $0x3c0] sm:$0xff]  ;;  %v559_v57 = vld [vmem:[#allocation2 + $0x3a8] sm:$0xff]  ;;  %v146_v60 = vperm.slane %v2122_v47, 0  ;;  %v148_v4 = vperm.slane %v2122_v47, 2  ;;  %v533_v14 = vld [vmem:[#allocation2 + $0x2d8] sm:$0xff] }
  0x21   :  { %644 = vmatpush.msra.mxu2 %v571_v31  ;;  %622 = vmatpush.msra.mxu1 %v520_v34  ;;  %v442_v51 = vld [vmem:[#allocation2] sm:$0xff]  ;;  %v505_v15 = vld [vmem:[#allocation2 + $0x1f8] sm:$0xff] }
  0x22   :  { %601 = vmatpush.msra.mxu0 %v466_v12  ;;  %668 = vmatpush.msra.mxu3 %v473_v38  ;;  %v2130_v55 = vld [vmem:[%s2887_s2] sm:$0x7]  ;;  %v455_v38 = vld [vmem:[#allocation2 + $0x68] sm:$0xff]  ;;  %v521_v44 = vld [vmem:[#allocation2 + $0x278] sm:$0xff] }
  0x23   :  { %1884 = vset.pattern.permute.xlu0 %v2031_v0  ;;  %645 = vmatpush.msra.mxu2 %v568_v37  ;;  %v147_v0 = vperm.slane %v2122_v47, 1  ;;  %v166_v6 = vperm.slane %v2130_v55, 0  ;;  %v167_v17 = vperm.slane %v2130_v55, 1  ;;  %v458_v25 = vld [vmem:[#allocation2 + $0x80] sm:$0xff] }
  0x24   :  { %602 = vmatpush.msra.mxu0 %v463_v16  ;;  %623 = vmatpush.msra.mxu1 %v517_v41  ;;  %v530_v26 = vld [vmem:[#allocation2 + $0x2c0] sm:$0xff] }
  0x25   :  { %646 = vmatpush.msra.mxu2 %v565_v42  ;;  %669 = vmatpush.msra.mxu3 %v470_v43  ;;  %v502_v32 = vld [vmem:[#allocation2 + $0x1e0] sm:$0xff]  ;;  %v499_v43 = vld [vmem:[#allocation2 + $0x1c8] sm:$0xff] }
  0x26   :  { %603 = vmatpush.msra.mxu0 %v460_v20  ;;  %624 = vmatpush.msra.mxu1 %v514_v46  ;;  %v553_v20 = vld [vmem:[#allocation2 + $0x378] sm:$0xff]  ;;  %v550_v37 = vld [vmem:[#allocation2 + $0x360] sm:$0xff] }
  0x27   :  { %647 = vmatpush.msra.mxu2 %v562_v49  ;;  %670 = vmatpush.msra.mxu3 %v467_v50  ;;  %v452_v49 = vld [vmem:[#allocation2 + $0x50] sm:$0xff]  ;;  %v486_v47 = vld [vmem:[#allocation2 + $0x160] sm:$0xff] }
  0x28   :  { %604 = vmatpush.msra.mxu0 %v457_v24  ;;  %625 = vmatpush.msra.mxu1 %v511_v52  ;;  %v524_v52 = vld [vmem:[#allocation2 + $0x290] sm:$0xff] }
  0x29   :  { %648 = vmatpush.msra.mxu2 %v559_v57  ;;  %671 = vmatpush.msra.mxu3 %v464_v58 }
  0x2a   :  { %605 = vmatpush.msra.mxu0 %v454_v29  ;;  %626 = vmatpush.msra.mxu1 %v508_v2  ;;  %v168_v29 = vperm.slane %v2130_v55, 2  ;;  %v471_v55 = vld [vmem:[#allocation2 + $0xe8] sm:$0xff] }
  0x2b   :  { %649 = vmatpush.msra.mxu2 %v556_v3  ;;  %672 = vmatpush.msra.mxu3 %v461_v9  ;;  %v490_v9 = vld [vmem:[#allocation2 + $0x180] sm:$0xff] }
  0x2c   :  { %606 = vmatpush.msra.mxu0 %v451_v33  ;;  %627 = vmatpush.msra.mxu1 %v505_v15  ;;  %v515_v15 = vld [vmem:[#allocation2 + $0x248] sm:$0xff] }
  0x2d   :  { %650 = vmatpush.msra.mxu2 %v553_v20  ;;  %673 = vmatpush.msra.mxu3 %v458_v25 }
  0x2e   :  { %607 = vmatpush.msra.mxu0 %v448_v40  ;;  %628 = vmatpush.msra.mxu1 %v502_v32 }
  0x2f   :  { %651 = vmatpush.msra.mxu2 %v550_v37  ;;  %674 = vmatpush.msra.mxu3 %v455_v38 }
  0x30   :  { %608 = vmatpush.msra.mxu0 %v445_v45  ;;  %629 = vmatpush.msra.mxu1 %v499_v43 }
  0x31   :  { %675 = vmatpush.msra.mxu3 %v452_v49 }
  0x32   :  { %609 = vmatpush.msra.mxu0 %v442_v51 }
  0x34   :  { %686 = vmatpush.msrb.mxu0 %v536_v63  ;;  %v449_v63 = vld [vmem:[#allocation2 + $0x38] sm:$0xff] }
  0x35   :  { %676 = vmatpush.msra.mxu3 %v449_v63  ;;  %v503_v63 = vld [vmem:[#allocation2 + $0x1e8] sm:$0xff] }
  0x36   :  { %687 = vmatpush.msrb.mxu0 %v533_v14 }
  0x38   :  { %688 = vmatpush.msrb.mxu0 %v530_v26 }
  0x6c   :  { %v2103_v27 = vpop.permute.xlu2 %113 }
  0x6d   :  { %v126_v1 = vmul.f32 %v117_v48, %v2103_v27  ;;  %v127_v33 = vmul.f32 %v118_v61, %v2103_v27 }
  0x76   :  { %v2132_v56 = vpop.permute.xlu2 %142 }
  0x77   :  { %v155_v8 = vmul.f32 %v146_v60, %v2132_v56  ;;  %v157_v14 = vmul.f32 %v148_v4, %v2132_v56 }
  0x83   :  { %v2107_v36 = vpop.permute.xlu1 %138 }
  0x84   :  { %v2105_v35 = vpop.permute.xlu0 %85  ;;  %v152_v21 = vmul.f32 %v146_v60, %v2107_v36  ;;  %v153_v22 = vmul.f32 %v147_v0, %v2107_v36  ;;  %v154_v28 = vmul.f32 %v148_v4, %v2107_v36  ;;  %v527_v36 = vld [vmem:[#allocation2 + $0x2a8] sm:$0xff] }
  0x85   :  { %v100_v10 = vmul.f32 %v94_v53, %v2105_v35  ;;  %v101_v11 = vmul.f32 %v95_v54, %v2105_v35  ;;  %v102_v16 = vmul.f32 %v96_v59, %v2105_v35  ;;  %689 = vmatpush.msrb.mxu0 %v527_v36  ;;  %v575_v36 = vld [vmem:[#allocation2 + $0x428] sm:$0xff] }
  0x87   :  { %690 = vmatpush.msrb.mxu0 %v524_v52  ;;  %v480_v52 = vld [vmem:[#allocation2 + $0x130] sm:$0xff] }
  0x89   :  { %691 = vmatpush.msrb.mxu0 %v521_v44 }
  0x8c   :  { %v91_v5 = vpop.permute.xlu1 %90 }
  0x8d   :  { %v110_v7 = vpop.permute.xlu0 %109  ;;  %v103_v12 = vmul.f32 %v94_v53, %v91_v5  ;;  %v104_v40 = vmul.f32 %v95_v54, %v91_v5  ;;  %v496_v53 = vld [vmem:[#allocation2 + $0x1b0] sm:$0xff]  ;;  %v128_v54 = vmul.f32 %v119_v62, %v2103_v27  ;;  %v105_v57 = vmul.f32 %v96_v59, %v91_v5  ;;  %v493_v59 = vld [vmem:[#allocation2 + $0x198] sm:$0xff] }
  0x8e   :  { %v123_v13 = vmul.f32 %v117_v48, %v110_v7  ;;  %v124_v18 = vmul.f32 %v118_v61, %v110_v7  ;;  %v125_v19 = vmul.f32 %v119_v62, %v110_v7  ;;  %v547_v48 = vld [vmem:[#allocation2 + $0x348] sm:$0xff]  ;;  %v544_v61 = vld [vmem:[#allocation2 + $0x330] sm:$0xff]  ;;  %v156_v27 = vmul.f32 %v147_v0, %v2132_v56  ;;  %630 = vmatpush.msra.mxu1 %v496_v53  ;;  %v541_v5 = vld [vmem:[#allocation2 + $0x318] sm:$0xff] }
  0x8f   :  { %v132_v23 = vadd.f32 %v126_v1, %v103_v12  ;;  %v133_v1 = vadd.f32 %v127_v33, %v104_v40  ;;  %652 = vmatpush.msra.mxu2 %v547_v48  ;;  %v518_v7 = vld [vmem:[#allocation2 + $0x260] sm:$0xff]  ;;  %v134_v12 = vadd.f32 %v128_v54, %v105_v57  ;;  %v528_v53 = vld [vmem:[#allocation2 + $0x2b0] sm:$0xff] }
  0x90   :  { %v129_v24 = vadd.f32 %v123_v13, %v100_v10  ;;  %v130_v30 = vadd.f32 %v124_v18, %v101_v11  ;;  %v131_v31 = vadd.f32 %v125_v19, %v102_v16  ;;  %v538_v10 = vld [vmem:[#allocation2 + $0x300] sm:$0xff]  ;;  %v443_v11 = vld [vmem:[#allocation2 + $0x8] sm:$0xff]  ;;  %631 = vmatpush.msra.mxu1 %v493_v59  ;;  %v584_v16 = vld [vmem:[#allocation2 + $0x470] sm:$0xff]  ;;  %692 = vmatpush.msrb.mxu0 %v518_v7 }
  0x91   :  { %v161_v35 = vadd.f32 %v155_v8, %v132_v23  ;;  %653 = vmatpush.msra.mxu2 %v544_v61  ;;  %v489_v18 = vld [vmem:[#allocation2 + $0x178] sm:$0xff]  ;;  %v512_v23 = vld [vmem:[#allocation2 + $0x230] sm:$0xff]  ;;  %v534_v56 = vld [vmem:[#allocation2 + $0x2e0] sm:$0xff]  ;;  %v163_v33 = vadd.f32 %v157_v14, %v134_v12 }
  0x92   :  { %v158_v34 = vadd.f32 %v152_v21, %v129_v24  ;;  %v159_v41 = vadd.f32 %v153_v22, %v130_v30  ;;  %v160_v42 = vadd.f32 %v154_v28, %v131_v31  ;;  %v162_v21 = vadd.f32 %v156_v27, %v133_v1  ;;  %v537_v22 = vld [vmem:[#allocation2 + $0x2f8] sm:$0xff]  ;;  %632 = vmatpush.msra.mxu1 %v490_v9  ;;  %v578_v30 = vld [vmem:[#allocation2 + $0x440] sm:$0xff]  ;;  %v572_v1 = vld [vmem:[#allocation2 + $0x410] sm:$0xff] }
  0x93   :  { %v2162_v46 = vadd.f32 %v166_v6, %v161_v35  ;;  %654 = vmatpush.msra.mxu2 %v541_v5  ;;  %v581_v24 = vld [vmem:[#allocation2 + $0x458] sm:$0xff]  ;;  %693 = vmatpush.msrb.mxu0 %v515_v15  ;;  %v531_v35 = vld [vmem:[#allocation2 + $0x2c8] sm:$0xff]  ;;  %v500_v14 = vld [vmem:[#allocation2 + $0x1d0] sm:$0xff] }
  0x94   :  { %v2160_v45 = vadd.f32 %v166_v6, %v158_v34  ;;  %v2166_v50 = vadd.f32 %v167_v17, %v159_v41  ;;  %v2170_v51 = vadd.f32 %v168_v29, %v160_v42  ;;  %v446_v6 = vld [vmem:[#allocation2 + $0x20] sm:$0xff]  ;;  %v509_v28 = vld [vmem:[#allocation2 + $0x218] sm:$0xff]  ;;  %709 = vmatpush.msrb.mxu1 %v584_v16  ;;  %v483_v34 = vld [vmem:[#allocation2 + $0x148] sm:$0xff]  ;;  %v2218_v41 = vadd.f32 %v167_v17, %v162_v21 }
  0x95   :  { %v2181_v60 = vmul.f32 0.70710677, %v2162_v46  ;;  %677 = vmatpush.msra.mxu3 %v446_v6  ;;  %655 = vmatpush.msra.mxu2 %v538_v10  ;;  %v506_v42 = vld [vmem:[#allocation2 + $0x200] sm:$0xff]  ;;  %v525_v12 = vld [vmem:[#allocation2 + $0x298] sm:$0xff] }
  0x96   :  { %v2178_v58 = vmul.f32 0.70710677, %v2160_v45  ;;  %v2184_v2 = vmul.f32 0.70710677, %v2166_v50  ;;  %v2187_v39 = vmul.f32 0.70710677, %v2170_v51  ;;  %694 = vmatpush.msrb.mxu0 %v512_v23  ;;  %710 = vmatpush.msrb.mxu1 %v581_v24 }
  0x97   :  { %v310_v3 = vmul.f32 %v2181_v60, %v2181_v60  ;;  %678 = vmatpush.msra.mxu3 %v443_v11  ;;  %732 = vmatpush.msrb.mxu2 %v489_v18  ;;  %v477_v11 = vld [vmem:[#allocation2 + $0x118] sm:$0xff]  ;;  %v474_v23 = vld [vmem:[#allocation2 + $0x100] sm:$0xff] }
  0x98   :  { %v190_v62 = vmul.f32 %v2178_v58, %v2178_v58  ;;  %v230_v8 = vmul.f32 %v2184_v2, %v2184_v2  ;;  %v270_v0 = vmul.f32 %v2187_v39, %v2187_v39  ;;  %695 = vmatpush.msrb.mxu0 %v509_v28  ;;  %711 = vmatpush.msrb.mxu1 %v578_v30  ;;  %v522_v24 = vld [vmem:[#allocation2 + $0x280] sm:$0xff]  ;;  %v497_v30 = vld [vmem:[#allocation2 + $0x1b8] sm:$0xff] }
  0x99   :  { %v2209_v25 = vmin.f32 %v310_v3, 16.0  ;;  %755 = vmatpush.msrb.mxu3 %v537_v22  ;;  %733 = vmatpush.msrb.mxu2 %v486_v47  ;;  %v569_v22 = vld [vmem:[#allocation2 + $0x3f8] sm:$0xff]  ;;  %v2237_v28 = vadd.f32 %v168_v29, %v163_v33  ;;  %v519_v29 = vld [vmem:[#allocation2 + $0x268] sm:$0xff] }
  0x9a   :  { %v2200_v13 = vmin.f32 %v190_v62, 16.0  ;;  %v2205_v19 = vmin.f32 %v230_v8, 16.0  ;;  %v2207_v20 = vmin.f32 %v270_v0, 16.0  ;;  %696 = vmatpush.msrb.mxu0 %v506_v42  ;;  %712 = vmatpush.msrb.mxu1 %v575_v36 }
  0x9b   :  { %v312_v17 = vmul.f32 2.1237322e-06, %v2209_v25  ;;  %756 = vmatpush.msrb.mxu3 %v534_v56  ;;  %v323_v62 = vmul.f32 3.8918573e-05, %v2209_v25  ;;  %734 = vmatpush.msrb.mxu2 %v483_v34 }
  0x9c   :  { %v192_v4 = vmul.f32 2.1237322e-06, %v2200_v13  ;;  %v203_v26 = vmul.f32 3.8918573e-05, %v2200_v13  ;;  %v232_v31 = vmul.f32 2.1237322e-06, %v2205_v19  ;;  %697 = vmatpush.msrb.mxu0 %v503_v63  ;;  %713 = vmatpush.msrb.mxu1 %v572_v1 }
  0x9d   :  { %v243_v32 = vmul.f32 3.8918573e-05, %v2205_v19  ;;  %v272_v40 = vmul.f32 2.1237322e-06, %v2207_v20  ;;  %v283_v49 = vmul.f32 3.8918573e-05, %v2207_v20  ;;  %757 = vmatpush.msrb.mxu3 %v531_v35  ;;  %735 = vmatpush.msrb.mxu2 %v480_v52 }
  0x9e   :  { %v193_v37 = vadd.f32 0.00028619796, %v192_v4  ;;  %v204_v38 = vadd.f32 0.001143296, %v203_v26  ;;  %v233_v43 = vadd.f32 0.00028619796, %v232_v31  ;;  %698 = vmatpush.msrb.mxu0 %v500_v14  ;;  %714 = vmatpush.msrb.mxu1 %v569_v22 }
  0x9f   :  { %v244_v48 = vadd.f32 0.001143296, %v243_v32  ;;  %v273_v61 = vadd.f32 0.00028619796, %v272_v40  ;;  %v284_v59 = vadd.f32 0.001143296, %v283_v49  ;;  %758 = vmatpush.msrb.mxu3 %v528_v53  ;;  %736 = vmatpush.msrb.mxu2 %v477_v11 }
  0xa0   :  { %v194_v54 = vmul.f32 %v193_v37, %v2200_v13  ;;  %v205_v57 = vmul.f32 %v204_v38, %v2200_v13  ;;  %v234_v27 = vmul.f32 %v233_v43, %v2205_v19  ;;  %v313_v7 = vadd.f32 0.00028619796, %v312_v17  ;;  %v566_v31 = vld [vmem:[#allocation2 + $0x3e0] sm:$0xff]  ;;  %v563_v53 = vld [vmem:[#allocation2 + $0x3c8] sm:$0xff]  ;;  %699 = vmatpush.msrb.mxu0 %v497_v30  ;;  %v468_v17 = vld [vmem:[#allocation2 + $0xd0] sm:$0xff] }
  0xa1   :  { %v245_v44 = vmul.f32 %v244_v48, %v2205_v19  ;;  %v274_v6 = vmul.f32 %v273_v61, %v2207_v20  ;;  %v285_v9 = vmul.f32 %v284_v59, %v2207_v20  ;;  %v324_v10 = vadd.f32 0.001143296, %v323_v62  ;;  %759 = vmatpush.msrb.mxu3 %v525_v12  ;;  %737 = vmatpush.msrb.mxu2 %v474_v23  ;;  %v494_v52 = vld [vmem:[#allocation2 + $0x1a0] sm:$0xff]  ;;  %v516_v63 = vld [vmem:[#allocation2 + $0x250] sm:$0xff] }
  0xa2   :  { %v195_v3 = vadd.f32 0.0036580483, %v194_v54  ;;  %v206_v5 = vadd.f32 0.014752088, %v205_v57  ;;  %v235_v8 = vadd.f32 0.0036580483, %v234_v27  ;;  %v314_v21 = vmul.f32 %v313_v7, %v2209_v25  ;;  %715 = vmatpush.msrb.mxu1 %v566_v31  ;;  %700 = vmatpush.msrb.mxu0 %v494_v52 }
  0xa3   :  { %v246_v0 = vadd.f32 0.014752088, %v245_v44  ;;  %v275_v18 = vadd.f32 0.0036580483, %v274_v6  ;;  %v286_v4 = vadd.f32 0.014752088, %v285_v9  ;;  %v325_v26 = vmul.f32 %v324_v10, %v2209_v25  ;;  %760 = vmatpush.msrb.mxu3 %v522_v24  ;;  %738 = vmatpush.msrb.mxu2 %v471_v55 }
  0xa4   :  { %v196_v15 = vmul.f32 %v195_v3, %v2200_v13  ;;  %v207_v16 = vmul.f32 %v206_v5, %v2200_v13  ;;  %v236_v47 = vmul.f32 %v235_v8, %v2205_v19  ;;  %v315_v48 = vadd.f32 0.0036580483, %v314_v21  ;;  %716 = vmatpush.msrb.mxu1 %v563_v53  ;;  %v465_v21 = vld [vmem:[#allocation2 + $0xb8] sm:$0xff] }
  0xa5   :  { %v247_v56 = vmul.f32 %v246_v0, %v2205_v19  ;;  %v276_v35 = vmul.f32 %v275_v18, %v2207_v20  ;;  %v287_v40 = vmul.f32 %v286_v4, %v2207_v20  ;;  %v326_v42 = vadd.f32 0.014752088, %v325_v26  ;;  %761 = vmatpush.msrb.mxu3 %v519_v29  ;;  %739 = vmatpush.msrb.mxu2 %v468_v17  ;;  %v560_v18 = vld [vmem:[#allocation2 + $0x3b0] sm:$0xff]  ;;  %v513_v24 = vld [vmem:[#allocation2 + $0x238] sm:$0xff]  ;;  %v462_v4 = vld [vmem:[#allocation2 + $0xa0] sm:$0xff] }
  0xa6   :  { %v197_v32 = vadd.f32 0.05243302, %v196_v15  ;;  %v208_v34 = vadd.f32 0.112945676, %v207_v16  ;;  %v237_v37 = vadd.f32 0.05243302, %v236_v47  ;;  %v316_v0 = vmul.f32 %v315_v48, %v2209_v25  ;;  %717 = vmatpush.msrb.mxu1 %v560_v18 }
  0xa7   :  { %v248_v38 = vadd.f32 0.112945676, %v247_v56  ;;  %v277_v43 = vadd.f32 0.05243302, %v276_v35  ;;  %v2244_v49 = vmul.f32 0.70710677, %v2218_v41  ;;  %v327_v59 = vmul.f32 %v326_v42, %v2209_v25  ;;  %762 = vmatpush.msrb.mxu3 %v516_v63  ;;  %740 = vmatpush.msrb.mxu2 %v465_v21 }
  0xa8   :  { %v198_v33 = vmul.f32 %v197_v32, %v2200_v13  ;;  %v209_v36 = vmul.f32 %v208_v34, %v2200_v13  ;;  %v238_v54 = vmul.f32 %v237_v37, %v2205_v19  ;;  %v288_v61 = vadd.f32 0.112945676, %v287_v40  ;;  %v491_v16 = vld [vmem:[#allocation2 + $0x188] sm:$0xff]  ;;  %v557_v47 = vld [vmem:[#allocation2 + $0x398] sm:$0xff]  ;;  %v510_v26 = vld [vmem:[#allocation2 + $0x220] sm:$0xff] }
  0xa9   :  { %v249_v57 = vmul.f32 %v248_v38, %v2205_v19  ;;  %v278_v44 = vmul.f32 %v277_v43, %v2207_v20  ;;  %v2252_v6 = vmul.f32 0.70710677, %v2237_v28  ;;  %v350_v14 = vmul.f32 %v2244_v49, %v2244_v49  ;;  %701 = vmatpush.msrb.mxu0 %v491_v16  ;;  %763 = vmatpush.msrb.mxu3 %v513_v24  ;;  %v554_v34 = vld [vmem:[#allocation2 + $0x380] sm:$0xff]  ;;  %v459_v35 = vld [vmem:[#allocation2 + $0x88] sm:$0xff]  ;;  %v456_v48 = vld [vmem:[#allocation2 + $0x70] sm:$0xff] }
  0xaa   :  { %v199_v1 = vadd.f32 0.18741608, %v198_v33  ;;  %v210_v27 = vadd.f32 0.4994258, %v209_v36  ;;  %v239_v62 = vadd.f32 0.18741608, %v238_v54  ;;  %v289_v5 = vmul.f32 %v288_v61, %v2207_v20  ;;  %718 = vmatpush.msrb.mxu1 %v557_v47  ;;  %741 = vmatpush.msrb.mxu2 %v462_v4 }
  0xab   :  { %v250_v3 = vadd.f32 0.4994258, %v249_v57  ;;  %v279_v11 = vadd.f32 0.18741608, %v278_v44  ;;  %v328_v22 = vadd.f32 0.112945676, %v327_v59  ;;  %764 = vmatpush.msrb.mxu3 %v510_v26 }
  0xac   :  { %v200_v7 = vmul.f32 %v199_v1, %v2200_v13  ;;  %v211_v8 = vmul.f32 %v210_v27, %v2200_v13  ;;  %v240_v9 = vmul.f32 %v239_v62, %v2205_v19  ;;  %v290_v12 = vadd.f32 0.4994258, %v289_v5  ;;  %v507_v37 = vld [vmem:[#allocation2 + $0x208] sm:$0xff]  ;;  %719 = vmatpush.msrb.mxu1 %v554_v34  ;;  %742 = vmatpush.msrb.mxu2 %v459_v35  ;;  %v504_v54 = vld [vmem:[#allocation2 + $0x1f0] sm:$0xff] }
  0xad   :  { %v251_v10 = vmul.f32 %v250_v3, %v2205_v19  ;;  %v390_v19 = vmul.f32 %v2252_v6, %v2252_v6  ;;  %v317_v30 = vadd.f32 0.05243302, %v316_v0  ;;  %v280_v32 = vmul.f32 %v279_v11, %v2207_v20  ;;  %v551_v43 = vld [vmem:[#allocation2 + $0x368] sm:$0xff]  ;;  %765 = vmatpush.msrb.mxu3 %v507_v37 }
  0xae   :  { %v2261_v15 = vadd.f32 1.0, %v211_v8  ;;  %v291_v23 = vmul.f32 %v290_v12, %v2207_v20  ;;  %v201_v56 = vadd.f32 1.1283791, %v200_v7  ;;  %v241_v31 = vadd.f32 1.1283791, %v240_v9  ;;  %720 = vmatpush.msrb.mxu1 %v551_v43  ;;  %743 = vmatpush.msrb.mxu2 %v456_v48 }
  0xaf   :  { %v2263_v13 = vadd.f32 1.0, %v251_v10  ;;  %v2271_v38 = vmin.f32 %v350_v14, 16.0  ;;  %v2274_v40 = vmul.f32 0.5, %v2160_v45  ;;  %v329_v55 = vmul.f32 %v328_v22, %v2209_v25  ;;  %766 = vmatpush.msrb.mxu3 %v504_v54 }
  0xb0   :  { %1886 = vrcp.f32 %v2261_v15  ;;  %v222_v42 = vand.u32 2147483647, %v2261_v15  ;;  %v224_v29 = vand.u32 2147483648, %v2261_v15  ;;  %v2280_v33 = vmul.f32 0.5, %v2166_v50 }
  0xb1   :  { %1888 = vrcp.f32 %v2263_v13  ;;  %v264_v20 = vand.u32 2147483648, %v2263_v13  ;;  %v2283_v36 = vadd.f32 1.0, %v291_v23  ;;  %v2285_v45 = vmin.f32 %v390_v19, 16.0 }
  0xb2   :  { %v2288_v52 = vmul.f32 %v201_v56, %v2178_v58  ;;  %v262_v53 = vand.u32 2147483647, %v2263_v13  ;;  %v318_v50 = vmul.f32 %v317_v30, %v2209_v25  ;;  %vm218_vm0 = vweird.f32 %v2261_v15 }
  0xb3   :  { %v242_v57 = vmul.f32 %v241_v31, %v2184_v2  ;;  %v281_v61 = vadd.f32 1.1283791, %v280_v32  ;;  %1890 = vrcp.f32 %v2283_v36  ;;  %vm258_vm1 = vweird.f32 %v2263_v13 }
  0xb4   :  { %v330_v58 = vadd.f32 0.4994258, %v329_v55  ;;  %v352_v63 = vmul.f32 2.1237322e-06, %v2271_v38  ;;  %v363_v1 = vmul.f32 3.8918573e-05, %v2271_v38  ;;  %vm298_vm6 = vweird.f32 %v2283_v36 }
  0xb5   :  { %vm2299_vm2 = vcmp.eq.f32.partialorder %v222_v42, 8.507059e+37  ;;  %v225_v2 = vor.u32 1.1754944e-38, %v224_v29  ;;  %v265_v62 = vor.u32 1.1754944e-38, %v264_v20  ;;  %vm2304_vm3 = vcmp.eq.f32.partialorder %v262_v53, 8.507059e+37 }
  0xb6   :  { %v1887_v17 = vpop.eup %1886  ;;  %v302_v7 = vand.u32 2147483647, %v2283_v36  ;;  %v319_v8 = vadd.f32 0.18741608, %v318_v50  ;;  %v331_v0 = vmul.f32 %v330_v58, %v2209_v25  ;;  %v282_v10 = vmul.f32 %v281_v61, %v2187_v39 }
  0xb7   :  { %v1889_v27 = vpop.eup %1888  ;;  %v214_v44 = vmul.f32 %v1887_v17, %v2261_v15  ;;  %v353_v11 = vadd.f32 0.00028619796, %v352_v63  ;;  %v364_v12 = vadd.f32 0.001143296, %v363_v1  ;;  %vm219_vm4 = vweird.f32 %v1887_v17 }
  0xb8   :  { %v254_v3 = vmul.f32 %v1889_v27, %v2263_v13  ;;  %v304_v16 = vand.u32 2147483648, %v2283_v36  ;;  %v2312_v18 = vadd.f32 1.0, %v331_v0  ;;  %vm259_vm5 = vweird.f32 %v1889_v27  ;;  %vm220_vm8 = vmor %vm218_vm0, %vm219_vm4 }
  0xb9   :  { %v215_v9 = vsub.f32 1.0, %v214_v44  ;;  %v1891_v21 = vpop.eup %1890  ;;  %v354_v23 = vmul.f32 %v353_v11, %v2271_v38  ;;  %v365_v24 = vmul.f32 %v364_v12, %v2271_v38  ;;  %v392_v39 = vmul.f32 2.1237322e-06, %v2285_v45  ;;  %vm260_vm9 = vmor %vm258_vm1, %vm259_vm5 }
  0xba   :  { %v255_v14 = vsub.f32 1.0, %v254_v3  ;;  %v294_v19 = vmul.f32 %v1891_v21, %v2283_v36  ;;  %1892 = vrcp.f32 %v2312_v18  ;;  %vm2320_vm7 = vcmp.eq.f32.partialorder %v302_v7, 8.507059e+37 }
  0xbb   :  { %v216_v22 = vmul.f32 %v1887_v17, %v215_v9  ;;  %v320_v26 = vmul.f32 %v319_v8, %v2209_v25  ;;  %v355_v32 = vadd.f32 0.0036580483, %v354_v23  ;;  %v366_v34 = vadd.f32 0.014752088, %v365_v24  ;;  %v585_v9 = vld [vmem:[#allocation2 + $0x478] sm:$0xff] }
  0xbc   :  { %v256_v47 = vmul.f32 %v1889_v27, %v255_v14  ;;  %v295_v31 = vsub.f32 1.0, %v294_v19  ;;  %vm299_vm10 = vweird.f32 %v1891_v21  ;;  %v305_v37 = vor.u32 1.1754944e-38, %v304_v16  ;;  %v579_v19 = vld [vmem:[#allocation2 + $0x448] sm:$0xff] }
  0xbd   :  { %v217_v56 = vadd.f32 %v1887_v17, %v216_v22  ;;  %v403_v42 = vmul.f32 3.8918573e-05, %v2285_v45  ;;  %v393_v15 = vadd.f32 0.00028619796, %v392_v39  ;;  %v321_v48 = vadd.f32 1.1283791, %v320_v26  ;;  %vm300_vm11 = vmor %vm298_vm6, %vm299_vm10 }
  0xbe   :  { %v257_v30 = vadd.f32 %v1889_v27, %v256_v47  ;;  %v296_v29 = vmul.f32 %v1891_v21, %v295_v31  ;;  %v367_v53 = vmul.f32 %v366_v34, %v2271_v38  ;;  %v342_v61 = vand.u32 2147483647, %v2312_v18  ;;  %v576_v31 = vld [vmem:[#allocation2 + $0x430] sm:$0xff] }
  0xbf   :  { %v221_v35 = vsel %vm220_vm8, %v1887_v17, %v217_v56  ;;  %v356_v17 = vmul.f32 %v355_v32, %v2271_v38  ;;  %v404_v1 = vadd.f32 0.001143296, %v403_v42  ;;  %v344_v59 = vand.u32 2147483648, %v2312_v18 }
  0xc0   :  { %v226_v25 = vsel %vm2299_vm2, %v225_v2, %v221_v35  ;;  %v261_v55 = vsel %vm260_vm9, %v1889_v27, %v257_v30  ;;  %v1893_v13 = vpop.eup %1892  ;;  %v297_v50 = vadd.f32 %v1891_v21, %v296_v29  ;;  %v368_v63 = vadd.f32 0.112945676, %v367_v53  ;;  %v573_v53 = vld [vmem:[#allocation2 + $0x418] sm:$0xff] }
  0xc1   :  { %v227_v20 = vmul.f32 %v226_v25, %v2288_v52  ;;  %v266_v43 = vsel %vm2304_vm3, %v265_v62, %v261_v55  ;;  %v334_v52 = vmul.f32 %v1893_v13, %v2312_v18  ;;  %vm339_vm12 = vweird.f32 %v1893_v13 }
  0xc2   :  { %v267_v54 = vmul.f32 %v266_v43, %v242_v57  ;;  %v301_v44 = vsel %vm300_vm11, %v1891_v21, %v297_v50  ;;  %v394_v57 = vmul.f32 %v393_v15, %v2285_v45  ;;  %v369_v5 = vmul.f32 %v368_v63, %v2271_v38  ;;  %v548_v15 = vld [vmem:[#allocation2 + $0x350] sm:$0xff]  ;;  %v501_v43 = vld [vmem:[#allocation2 + $0x1d8] sm:$0xff] }
  0xc3   :  { %v1833_v58 = vclamps-f32 %v227_v20, 1.0  ;;  %v306_v62 = vsel %vm2320_vm7, %v305_v37, %v301_v44  ;;  %v335_v3 = vsub.f32 1.0, %v334_v52  ;;  %v357_v8 = vadd.f32 0.05243302, %v356_v17  ;;  %v453_v20 = vld [vmem:[#allocation2 + $0x58] sm:$0xff]  ;;  %721 = vmatpush.msrb.mxu1 %v548_v15  ;;  %767 = vmatpush.msrb.mxu3 %v501_v43  ;;  %v498_v52 = vld [vmem:[#allocation2 + $0x1c0] sm:$0xff] }
  0xc4   :  { %v1834_v27 = vclamps-f32 %v267_v54, 1.0  ;;  %v307_v36 = vmul.f32 %v306_v62, %v282_v10  ;;  %v370_v12 = vadd.f32 0.4994258, %v369_v5  ;;  %v405_v14 = vmul.f32 %v404_v1, %v2285_v45  ;;  %v582_v10 = vld [vmem:[#allocation2 + $0x460] sm:$0xff]  ;;  %744 = vmatpush.msrb.mxu2 %v453_v20  ;;  %v447_v44 = vld [vmem:[#allocation2 + $0x28] sm:$0xff]  ;;  %v540_v43 = vld [vmem:[#allocation2 + $0x310] sm:$0xff] }
  0xc5   :  { %v430_v2 = vadd.f32 1.0, %v1833_v58  ;;  %v336_v11 = vmul.f32 %v1893_v13, %v335_v3  ;;  %v180_v21 = vmul.f32 0.5, %v2170_v51  ;;  %v322_v23 = vmul.f32 %v321_v48, %v2181_v60  ;;  %v450_v54 = vld [vmem:[#allocation2 + $0x40] sm:$0xff]  ;;  %768 = vmatpush.msrb.mxu3 %v498_v52  ;;  %v539_v62 = vld [vmem:[#allocation2 + $0x308] sm:$0xff]  ;;  %v444_v3 = vld [vmem:[#allocation2 + $0x10] sm:$0xff] }
  0xc6   :  { %v431_v7 = vadd.f32 1.0, %v1834_v27  ;;  %v1835_v22 = vclamps-f32 %v307_v36, 1.0  ;;  %vm338_vm13 = vweird.f32 %v2312_v18  ;;  %v371_v24 = vmul.f32 %v370_v12, %v2271_v38  ;;  %745 = vmatpush.msrb.mxu2 %v450_v54  ;;  %v542_v27 = vld [vmem:[#allocation2 + $0x320] sm:$0xff] }
  0xc7   :  { %v2350_v0 = vmul.f32 %v430_v2, %v2274_v40  ;;  %v337_v40 = vadd.f32 %v1893_v13, %v336_v11  ;;  %v406_v47 = vadd.f32 0.014752088, %v405_v14  ;;  %vm340_vm14 = vmor %vm338_vm13, %vm339_vm12  ;;  %vm343_vm15 = vcmp.eq.f32.partialorder %v342_v61, 8.507059e+37  ;;  %v561_v14 = vld [vmem:[#allocation2 + $0x3b8] sm:$0xff] }
  0xc8   :  { %v2354_v16 = vmul.f32 %v431_v7, %v2280_v33  ;;  %v432_v33 = vadd.f32 1.0, %v1835_v22  ;;  %v345_v51 = vor.u32 1.1754944e-38, %v344_v59  ;;  %v358_v60 = vmul.f32 %v357_v8, %v2271_v38  ;;  %v495_v59 = vld [vmem:[#allocation2 + $0x1a8] sm:$0xff]  ;;  %746 = vmatpush.msrb.mxu2 %v447_v44  ;;  %v492_v8 = vld [vmem:[#allocation2 + $0x190] sm:$0xff] }
  0xc9   :  { %610 = vmatmul.f32.vlgmr.msra.gmra.mxu0 %v2350_v0  ;;  %679 = vmatmul.f32.vlgmr.msra.gmra.mxu3 %v2350_v0  ;;  %v341_v39 = vsel %vm340_vm14, %v1893_v13, %v337_v40  ;;  %v2365_v56 = vadd.f32 1.0, %v371_v24  ;;  %v395_v4 = vadd.f32 0.0036580483, %v394_v57  ;;  %v407_v18 = vmul.f32 %v406_v47, %v2285_v45  ;;  %v545_v13 = vld [vmem:[#allocation2 + $0x338] sm:$0xff]  ;;  %v567_v57 = vld [vmem:[#allocation2 + $0x3e8] sm:$0xff] }
  0xca   :  { %633 = vmatmul.f32.vlgmr.msra.gmra.mxu1 %v2354_v16  ;;  %778 = vmatpush.msra.mxu0 %v585_v9  ;;  %v2368_v26 = vmul.f32 %v432_v33, %v180_v21  ;;  %v346_v30 = vsel %vm343_vm15, %v345_v51, %v341_v39  ;;  %v359_v37 = vadd.f32 0.18741608, %v358_v60  ;;  %v181_v55 = vmul.f32 0.5, %v2162_v46  ;;  %v570_v46 = vld [vmem:[#allocation2 + $0x400] sm:$0xff]  ;;  %v564_v9 = vld [vmem:[#allocation2 + $0x3d0] sm:$0xff]  ;;  %v555_v33 = vld [vmem:[#allocation2 + $0x388] sm:$0xff] }
  0xcb   :  { %v347_v32 = vmul.f32 %v346_v30, %v322_v23  ;;  %1894 = vrcp.f32 %v2365_v56  ;;  %v408_v34 = vadd.f32 0.112945676, %v407_v18  ;;  %v396_v42 = vmul.f32 %v395_v4, %v2285_v45  ;;  %722 = vmatpush.msrb.mxu1 %v545_v13  ;;  %769 = vmatpush.msrb.mxu3 %v495_v59  ;;  %v549_v18 = vld [vmem:[#allocation2 + $0x358] sm:$0xff]  ;;  %v1098_v44 = vld [vmem:[#allocation5 + $0x108] sm:$0xff] }
  0xcc   :  { %779 = vmatpush.msra.mxu0 %v582_v10  ;;  %656 = vmatmul.f32.vlgmr.msra.gmra.mxu2 %v2368_v26  ;;  %v360_v17 = vmul.f32 %v359_v37, %v2271_v38  ;;  %v384_v7 = vand.u32 2147483648, %v2365_v56  ;;  %v382_v12 = vand.u32 2147483647, %v2365_v56  ;;  %vm378_vm1 = vweird.f32 %v2365_v56  ;;  %v558_v10 = vld [vmem:[#allocation2 + $0x3a0] sm:$0xff] }
  0xcd   :  { %v1836_v35 = vclamps-f32 %v347_v32, 1.0  ;;  %v409_v25 = vmul.f32 %v408_v34, %v2285_v45  ;;  %v397_v58 = vadd.f32 0.05243302, %v396_v42  ;;  %723 = vmatpush.msrb.mxu1 %v542_v27  ;;  %747 = vmatpush.msrb.mxu2 %v444_v3  ;;  %v182_v30 = vmul.f32 0.5, %v2218_v41  ;;  %v546_v42 = vld [vmem:[#allocation2 + $0x340] sm:$0xff] }
  0xce   :  { %780 = vmatpush.msra.mxu0 %v579_v19  ;;  %v361_v5 = vadd.f32 1.1283791, %v360_v17  ;;  %770 = vmatpush.msrb.mxu3 %v492_v8  ;;  %v385_v22 = vor.u32 1.1754944e-38, %v384_v7  ;;  %vm383_vm3 = vcmp.eq.f32.partialorder %v382_v12, 8.507059e+37  ;;  %v183_v13 = vmul.f32 0.5, %v2237_v28  ;;  %v1104_v17 = vld [vmem:[#allocation5 + $0x138] sm:$0xff] }
  0xcf   :  { %v433_v29 = vadd.f32 1.0, %v1836_v35  ;;  %v410_v48 = vadd.f32 0.4994258, %v409_v25  ;;  %v398_v36 = vmul.f32 %v397_v58, %v2285_v45  ;;  %724 = vmatpush.msrb.mxu1 %v539_v62  ;;  %v1101_v58 = vld [vmem:[#allocation5 + $0x120] sm:$0xff]  ;;  %v1092_v62 = vld [vmem:[#allocation5 + $0xd8] sm:$0xff] }
  0xd0   :  { %781 = vmatpush.msra.mxu0 %v576_v31  ;;  %v362_v40 = vmul.f32 %v361_v5, %v2244_v49  ;;  %v2407_v28 = vld [vmem:[%s2889_s4] sm:$0x7] }
  0xd1   :  { %v1895_v50 = vpop.eup %1894  ;;  %v2375_v61 = vmul.f32 %v433_v29, %v181_v55  ;;  %v411_v1 = vmul.f32 %v410_v48, %v2285_v45  ;;  %v399_v23 = vadd.f32 0.18741608, %v398_v36  ;;  %v543_v55 = vld [vmem:[#allocation2 + $0x328] sm:$0xff]  ;;  %v1089_v7 = vld [vmem:[#allocation5 + $0xc0] sm:$0xff] }
  0xd2   :  { %782 = vmatpush.msra.mxu0 %v573_v53  ;;  %v374_v63 = vmul.f32 %v1895_v50, %v2365_v56  ;;  %vm379_vm0 = vweird.f32 %v1895_v50  ;;  %v552_v56 = vld [vmem:[#allocation2 + $0x370] sm:$0xff] }
  0xd3   :  { %613 = vmatmul.f32.gmra.mxu0 %v2375_v61  ;;  %682 = vmatmul.f32.gmra.mxu3 %v2375_v61  ;;  %v2382_v2 = vadd.f32 1.0, %v411_v1  ;;  %vm380_vm2 = vmor %vm378_vm1, %vm379_vm0  ;;  %v400_v19 = vmul.f32 %v399_v23, %v2285_v45 }
  0xd4   :  { %v375_v38 = vsub.f32 1.0, %v374_v63  ;;  %783 = vmatpush.msra.mxu0 %v570_v46 }
  0xd5   :  { %1896 = vrcp.f32 %v2382_v2  ;;  %v424_v32 = vand.u32 2147483648, %v2382_v2  ;;  %v401_v34 = vadd.f32 1.1283791, %v400_v19  ;;  %v422_v37 = vand.u32 2147483647, %v2382_v2  ;;  %v1102_v19 = vld [vmem:[#allocation5 + $0x128] sm:$0xff] }
  0xd6   :  { %v376_v11 = vmul.f32 %v1895_v50, %v375_v38  ;;  %784 = vmatpush.msra.mxu0 %v567_v57  ;;  %vm418_vm5 = vweird.f32 %v2382_v2  ;;  %v1095_v57 = vld [vmem:[#allocation5 + $0xf0] sm:$0xff] }
  0xd7   :  { %v425_v41 = vor.u32 1.1754944e-38, %v424_v32  ;;  %v402_v29 = vmul.f32 %v401_v34, %v2252_v6  ;;  %vm423_vm7 = vcmp.eq.f32.partialorder %v422_v37, 8.507059e+37  ;;  %v1107_v6 = vld [vmem:[#allocation5 + $0x150] sm:$0xff]  ;;  %v1096_v34 = vld [vmem:[#allocation5 + $0xf8] sm:$0xff] }
  0xd8   :  { %v377_v21 = vadd.f32 %v1895_v50, %v376_v11  ;;  %785 = vmatpush.msra.mxu0 %v564_v9  ;;  %v1111_v9 = vld [vmem:[#allocation5 + $0x170] sm:$0xff]  ;;  %v1086_v11 = vld [vmem:[#allocation5 + $0xa8] sm:$0xff] }
  0xda   :  { %v381_v24 = vsel %vm380_vm2, %v1895_v50, %v377_v21  ;;  %786 = vmatpush.msra.mxu0 %v561_v14  ;;  %v1108_v21 = vld [vmem:[#allocation5 + $0x158] sm:$0xff] }
  0xdb   :  { %v386_v47 = vsel %vm383_vm3, %v385_v22, %v381_v24  ;;  %702 = vmatmul.f32.vlgmr.msrb.gmra.mxu0 %v2354_v16  ;;  %771 = vmatmul.f32.vlgmr.msrb.gmra.mxu3 %v2354_v16  ;;  %v1897_v51 = vpop.eup %1896  ;;  %v1110_v16 = vld [vmem:[#allocation5 + $0x168] sm:$0xff]  ;;  %v1083_v22 = vld [vmem:[#allocation5 + $0x90] sm:$0xff] }
  0xdc   :  { %v387_v60 = vmul.f32 %v386_v47, %v362_v40  ;;  %787 = vmatpush.msra.mxu0 %v558_v10  ;;  %v414_v39 = vmul.f32 %v1897_v51, %v2382_v2  ;;  %vm419_vm4 = vweird.f32 %v1897_v51  ;;  %1217 = vmatpush.msra.mxu1 %v1110_v16  ;;  %v1105_v40 = vld [vmem:[#allocation5 + $0x140] sm:$0xff]  ;;  %v1080_v47 = vld [vmem:[#allocation5 + $0x78] sm:$0xff] }
  0xdd   :  { %vm420_vm6 = vmor %vm418_vm5, %vm419_vm4 }
  0xde   :  { %v1837_v4 = vclamps-f32 %v387_v60, 1.0  ;;  %788 = vmatpush.msra.mxu0 %v555_v33  ;;  %v415_v49 = vsub.f32 1.0, %v414_v39  ;;  %1218 = vmatpush.msra.mxu1 %v1107_v6  ;;  %v589_v60 = vperm.slane %v2407_v28, 1  ;;  %v1152_v6 = vld [vmem:[#allocation5 + $0x2b8] sm:$0xff] }
  0xe0   :  { %v434_v31 = vadd.f32 1.0, %v1837_v4  ;;  %789 = vmatpush.msra.mxu0 %v552_v56  ;;  %v416_v35 = vmul.f32 %v1897_v51, %v415_v49  ;;  %1219 = vmatpush.msra.mxu1 %v1104_v17  ;;  %v1077_v4 = vld [vmem:[#allocation5 + $0x60] sm:$0xff]  ;;  %v1087_v17 = vld [vmem:[#allocation5 + $0xb0] sm:$0xff] }
  0xe2   :  { %v440_v45 = vmul.f32 %v434_v31, %v182_v30  ;;  %790 = vmatpush.msra.mxu0 %v549_v18  ;;  %v417_v25 = vadd.f32 %v1897_v51, %v416_v35  ;;  %1220 = vmatpush.msra.mxu1 %v1101_v58  ;;  %v1099_v30 = vld [vmem:[#allocation5 + $0x110] sm:$0xff]  ;;  %v1074_v31 = vld [vmem:[#allocation5 + $0x48] sm:$0xff] }
  0xe3   :  { %v1071_v35 = vld [vmem:[#allocation5 + $0x30] sm:$0xff] }
  0xe4   :  { %636 = vmatmul.f32.gmra.mxu1 %v440_v45  ;;  %705 = vmatmul.f32.gmra.mxu0 %v440_v45  ;;  %v421_v15 = vsel %vm420_vm6, %v1897_v51, %v417_v25  ;;  %v1158_v25 = vld [vmem:[#allocation5 + $0x2e8] sm:$0xff]  ;;  %v1159_v58 = vld [vmem:[#allocation5 + $0x2f0] sm:$0xff] }
  0xe5   :  { %774 = vmatmul.f32.gmra.mxu3 %v440_v45  ;;  %791 = vmatpush.msra.mxu0 %v546_v42  ;;  %v426_v20 = vsel %vm423_vm7, %v425_v41, %v421_v15  ;;  %v1093_v41 = vld [vmem:[#allocation5 + $0xe0] sm:$0xff]  ;;  %v1155_v15 = vld [vmem:[#allocation5 + $0x2d0] sm:$0xff] }
  0xe6   :  { %v427_v48 = vmul.f32 %v426_v20, %v402_v29  ;;  %1221 = vmatpush.msra.mxu1 %v1098_v44  ;;  %1240 = vmatpush.msra.mxu2 %v1158_v25  ;;  %v1090_v20 = vld [vmem:[#allocation5 + $0xc8] sm:$0xff] }
  0xe7   :  { %792 = vmatpush.msra.mxu0 %v543_v55  ;;  %v1068_v55 = vld [vmem:[#allocation5 + $0x18] sm:$0xff]  ;;  %v1134_v25 = vld [vmem:[#allocation5 + $0x228] sm:$0xff] }
  0xe8   :  { %v1838_v53 = vclamps-f32 %v427_v48, 1.0  ;;  %1222 = vmatpush.msra.mxu1 %v1095_v57  ;;  %1241 = vmatpush.msra.mxu2 %v1155_v15 }
  0xe9   :  { %793 = vmatpush.msra.mxu0 %v540_v43 }
  0xea   :  { %v435_v54 = vadd.f32 1.0, %v1838_v53  ;;  %1223 = vmatpush.msra.mxu1 %v1092_v62  ;;  %v1065_v53 = vld [vmem:[#allocation5] sm:$0xff]  ;;  %1242 = vmatpush.msra.mxu2 %v1152_v6 }
  0xeb   :  { %1286 = vmatpush.msrb.mxu0 %v1111_v9 }
  0xec   :  { %725 = vmatmul.f32.vlgmr.msrb.gmra.mxu1 %v2368_v26  ;;  %794 = vmatmul.f32.vlgmr.msra.gmra.mxu0 %v2368_v26  ;;  %v441_v50 = vmul.f32 %v435_v54, %v183_v13  ;;  %v588_v26 = vperm.slane %v2407_v28, 0 }
  0xed   :  { %1224 = vmatpush.msra.mxu1 %v1089_v7  ;;  %1287 = vmatpush.msrb.mxu0 %v1108_v21  ;;  %v1153_v7 = vld [vmem:[#allocation5 + $0x2c0] sm:$0xff] }
  0xee   :  { %659 = vmatmul.f32.gmra.mxu2 %v441_v50 }
  0xef   :  { %1225 = vmatpush.msra.mxu1 %v1086_v11  ;;  %1288 = vmatpush.msrb.mxu0 %v1105_v40  ;;  %v1147_v40 = vld [vmem:[#allocation5 + $0x290] sm:$0xff] }
  0xf1   :  { %1226 = vmatpush.msra.mxu1 %v1083_v22  ;;  %1289 = vmatpush.msrb.mxu0 %v1102_v19 }
  0xf3   :  { %1227 = vmatpush.msra.mxu1 %v1080_v47  ;;  %1290 = vmatpush.msrb.mxu0 %v1099_v30 }
  0xf4   :  { %728 = vmatmul.f32.gmra.mxu1 %v441_v50  ;;  %797 = vmatmul.f32.gmra.mxu0 %v441_v50 }
  0xf5   :  { %1228 = vmatpush.msra.mxu1 %v1077_v4  ;;  %1291 = vmatpush.msrb.mxu0 %v1096_v34  ;;  %v1072_v34 = vld [vmem:[#allocation5 + $0x38] sm:$0xff] }
  0xf6   :  { %748 = vmatmul.f32.vlgmr.msrb.gmra.mxu2 %v2350_v0 }
  0xf7   :  { %1229 = vmatpush.msra.mxu1 %v1074_v31  ;;  %1292 = vmatpush.msrb.mxu0 %v1093_v41  ;;  %v590_v31 = vperm.slane %v2407_v28, 2  ;;  %v1203_v41 = vld [vmem:[#allocation5 + $0x450] sm:$0xff] }
  0xf9   :  { %1230 = vmatpush.msra.mxu1 %v1071_v35  ;;  %1293 = vmatpush.msrb.mxu0 %v1090_v20  ;;  %v1144_v35 = vld [vmem:[#allocation5 + $0x278] sm:$0xff] }
  0xfb   :  { %1231 = vmatpush.msra.mxu1 %v1068_v55  ;;  %1294 = vmatpush.msrb.mxu0 %v1087_v17  ;;  %v1069_v55 = vld [vmem:[#allocation5 + $0x20] sm:$0xff] }
  0xfd   :  { %1232 = vmatpush.msra.mxu1 %v1065_v53  ;;  %v1131_v53 = vld [vmem:[#allocation5 + $0x210] sm:$0xff] }
  0xfe   :  { %751 = vmatmul.f32.gmra.mxu2 %v2375_v61 }
  0xff   :  { %1309 = vmatpush.msrb.mxu1 %v1159_v58 }
 0x146   :  { %v611_v52 = vpop.f32.mrf.mxu0 }
 0x147   :  { %v612_v46 = vadd.f32 %v611_v52, %v588_v26  ;;  %v634_v0 = vpop.f32.mrf.mxu1 }
 0x149   :  { %v635_v63 = vadd.f32 %v634_v0, %v612_v46  ;;  %v1149_v0 = vld [vmem:[#allocation5 + $0x2a0] sm:$0xff] }
 0x14a   :  { %1243 = vmatpush.msra.mxu2 %v1149_v0  ;;  %v1160_v0 = vld [vmem:[#allocation5 + $0x2f8] sm:$0xff] }
 0x14c   :  { %v680_v24 = vpop.f32.mrf.mxu3 }
 0x14d   :  { %v681_v16 = vadd.f32 %v680_v24, %v589_v60 }
 0x14f   :  { %v657_v61 = vpop.f32.mrf.mxu2 }
 0x150   :  { %v2412_v1 = vadd.f32 %v657_v61, %v635_v63  ;;  %v2421_v2 = vpop.f32.mrf.mxu0  ;;  %v1084_v63 = vld [vmem:[#allocation5 + $0x98] sm:$0xff] }
 0x151   :  { %v1156_v61 = vld [vmem:[#allocation5 + $0x2d8] sm:$0xff]  ;;  %v615_v44 = vadd.f32 %v2421_v2, %v588_v26  ;;  %1295 = vmatpush.msrb.mxu0 %v1084_v63  ;;  %v1078_v26 = vld [vmem:[#allocation5 + $0x68] sm:$0xff] }
 0x152   :  { %v2415_v27 = vmul.f32 0.70710677, %v2412_v1  ;;  %1310 = vmatpush.msrb.mxu1 %v1156_v61  ;;  %v1150_v2 = vld [vmem:[#allocation5 + $0x2a8] sm:$0xff]  ;;  %v801_v28 = vmul.f32 0.5, %v2412_v1 }
 0x154   :  { %v813_v59 = vmul.f32 %v2415_v27, %v2415_v27  ;;  %1311 = vmatpush.msrb.mxu1 %v1153_v7 }
 0x156   :  { %v2419_v38 = vmin.f32 %v813_v59, 16.0  ;;  %v683_v43 = vpop.f32.mrf.mxu3  ;;  %1312 = vmatpush.msrb.mxu1 %v1150_v2  ;;  %v1197_v2 = vld [vmem:[#allocation5 + $0x420] sm:$0xff] }
 0x157   :  { %v684_v46 = vadd.f32 %v683_v43, %v589_v60 }
 0x158   :  { %v815_v3 = vmul.f32 2.1237322e-06, %v2419_v38  ;;  %v826_v5 = vmul.f32 3.8918573e-05, %v2419_v38  ;;  %v703_v56 = vpop.f32.mrf.mxu0  ;;  %1313 = vmatpush.msrb.mxu1 %v1147_v40 }
 0x159   :  { %v704_v42 = vadd.f32 %v703_v56, %v681_v16  ;;  %v1137_v56 = vld [vmem:[#allocation5 + $0x240] sm:$0xff]  ;;  %v1206_v16 = vld [vmem:[#allocation5 + $0x468] sm:$0xff] }
 0x15a   :  { %v816_v36 = vadd.f32 0.00028619796, %v815_v3  ;;  %v827_v8 = vadd.f32 0.001143296, %v826_v5  ;;  %v1146_v3 = vld [vmem:[#allocation5 + $0x288] sm:$0xff]  ;;  %v1081_v5 = vld [vmem:[#allocation5 + $0x80] sm:$0xff]  ;;  %1263 = vmatpush.msra.mxu3 %v1206_v16  ;;  %1314 = vmatpush.msrb.mxu1 %v1144_v35 }
 0x15b   :  { %1244 = vmatpush.msra.mxu2 %v1146_v3  ;;  %1296 = vmatpush.msrb.mxu0 %v1081_v5  ;;  %v1154_v16 = vld [vmem:[#allocation5 + $0x2c8] sm:$0xff]  ;;  %v1191_v35 = vld [vmem:[#allocation5 + $0x3f0] sm:$0xff] }
 0x15c   :  { %v817_v12 = vmul.f32 %v816_v36, %v2419_v38  ;;  %v828_v14 = vmul.f32 %v827_v8, %v2419_v38  ;;  %v1143_v8 = vld [vmem:[#allocation5 + $0x270] sm:$0xff]  ;;  %1264 = vmatpush.msra.mxu3 %v1203_v41  ;;  %v1129_v41 = vld [vmem:[#allocation5 + $0x200] sm:$0xff] }
 0x15d   :  { %1245 = vmatpush.msra.mxu2 %v1143_v8  ;;  %1297 = vmatpush.msrb.mxu0 %v1078_v26  ;;  %v1128_v26 = vld [vmem:[#allocation5 + $0x1f8] sm:$0xff] }
 0x15e   :  { %v818_v23 = vadd.f32 0.0036580483, %v817_v12  ;;  %v829_v10 = vadd.f32 0.014752088, %v828_v14 }
 0x160   :  { %v819_v33 = vmul.f32 %v818_v23, %v2419_v38  ;;  %v830_v51 = vmul.f32 %v829_v10, %v2419_v38  ;;  %v1140_v23 = vld [vmem:[#allocation5 + $0x258] sm:$0xff]  ;;  %v1075_v10 = vld [vmem:[#allocation5 + $0x50] sm:$0xff] }
 0x161   :  { %v2430_v39 = vpop.f32.mrf.mxu1  ;;  %v706_v52 = vpop.f32.mrf.mxu0  ;;  %1246 = vmatpush.msra.mxu2 %v1140_v23  ;;  %1298 = vmatpush.msrb.mxu0 %v1075_v10  ;;  %v1157_v23 = vld [vmem:[#allocation5 + $0x2e0] sm:$0xff] }
 0x162   :  { %v820_v49 = vadd.f32 0.05243302, %v819_v33  ;;  %v831_v18 = vadd.f32 0.112945676, %v830_v51  ;;  %v707_v62 = vadd.f32 %v706_v52, %v684_v46  ;;  %v638_v9 = vadd.f32 %v2430_v39, %v615_v44  ;;  %v1066_v52 = vld [vmem:[#allocation5 + $0x8] sm:$0xff]  ;;  %v1125_v10 = vld [vmem:[#allocation5 + $0x1e0] sm:$0xff] }
 0x163   :  { %1247 = vmatpush.msra.mxu2 %v1137_v56  ;;  %1299 = vmatpush.msrb.mxu0 %v1072_v34  ;;  %v1138_v46 = vld [vmem:[#allocation5 + $0x248] sm:$0xff] }
 0x164   :  { %v832_v32 = vmul.f32 %v831_v18, %v2419_v38  ;;  %v821_v37 = vmul.f32 %v820_v49, %v2419_v38  ;;  %v1122_v34 = vld [vmem:[#allocation5 + $0x1c8] sm:$0xff] }
 0x165   :  { %1248 = vmatpush.msra.mxu2 %v1134_v25  ;;  %1300 = vmatpush.msrb.mxu0 %v1069_v55  ;;  %v1151_v55 = vld [vmem:[#allocation5 + $0x2b0] sm:$0xff] }
 0x166   :  { %v833_v45 = vadd.f32 0.4994258, %v832_v32  ;;  %v822_v13 = vadd.f32 0.18741608, %v821_v37 }
 0x167   :  { %1249 = vmatpush.msra.mxu2 %v1131_v53  ;;  %1301 = vmatpush.msrb.mxu0 %v1066_v52  ;;  %v1188_v53 = vld [vmem:[#allocation5 + $0x3d8] sm:$0xff] }
 0x168   :  { %v834_v29 = vmul.f32 %v833_v45, %v2419_v38  ;;  %v823_v57 = vmul.f32 %v822_v13, %v2419_v38  ;;  %v1200_v13 = vld [vmem:[#allocation5 + $0x438] sm:$0xff] }
 0x169   :  { %v726_v48 = vpop.f32.mrf.mxu1  ;;  %v795_v8 = vpop.f32.mrf.mxu0  ;;  %1265 = vmatpush.msra.mxu3 %v1200_v13  ;;  %1378 = vmatpush.msra.mxu0 %v1160_v0 }
 0x16a   :  { %v2435_v54 = vadd.f32 1.0, %v834_v29  ;;  %v2437_v50 = vadd.f32 %v726_v48, %v704_v42  ;;  %v824_v14 = vadd.f32 1.1283791, %v823_v57  ;;  %v1141_v48 = vld [vmem:[#allocation5 + $0x260] sm:$0xff]  ;;  %1250 = vmatpush.msra.mxu2 %v1128_v26  ;;  %v1119_v29 = vld [vmem:[#allocation5 + $0x1b0] sm:$0xff] }
 0x16b   :  { %1315 = vmatpush.msrb.mxu1 %v1141_v48  ;;  %1266 = vmatpush.msra.mxu3 %v1197_v2  ;;  %v1123_v26 = vld [vmem:[#allocation5 + $0x1d0] sm:$0xff]  ;;  %v1145_v2 = vld [vmem:[#allocation5 + $0x280] sm:$0xff] }
 0x16c   :  { %1898 = vrcp.f32 %v2435_v54  ;;  %v2444_v59 = vmul.f32 0.70710677, %v2437_v50  ;;  %v845_v47 = vand.u32 2147483647, %v2435_v54  ;;  %v847_v60 = vand.u32 2147483648, %v2435_v54  ;;  %1379 = vmatpush.msra.mxu0 %v1157_v23  ;;  %1251 = vmatpush.msra.mxu2 %v1125_v10 }
 0x16d   :  { %vm841_vm10 = vweird.f32 %v2435_v54  ;;  %v825_v63 = vmul.f32 %v824_v14, %v2415_v27  ;;  %1316 = vmatpush.msrb.mxu1 %v1138_v46 }
 0x16e   :  { %v853_v36 = vmul.f32 %v2444_v59, %v2444_v59  ;;  %vm2478_vm9 = vcmp.eq.f32.partialorder %v845_v47, 8.507059e+37  ;;  %v848_v15 = vor.u32 1.1754944e-38, %v847_v60  ;;  %1380 = vmatpush.msra.mxu0 %v1154_v16  ;;  %1252 = vmatpush.msra.mxu2 %v1122_v34 }
 0x170   :  { %v2450_v11 = vmin.f32 %v853_v36, 16.0  ;;  %v772_v36 = vpop.f32.mrf.mxu3  ;;  %1381 = vmatpush.msra.mxu0 %v1151_v55  ;;  %1253 = vmatpush.msra.mxu2 %v1119_v29 }
 0x171   :  { %v729_v12 = vpop.f32.mrf.mxu1  ;;  %v660_v21 = vpop.f32.mrf.mxu2 }
 0x172   :  { %v2452_v38 = vpop.eup %1898  ;;  %v2454_v22 = vadd.f32 %v729_v12, %v707_v62  ;;  %v2459_v33 = vadd.f32 %v660_v21, %v638_v9  ;;  %v855_v51 = vmul.f32 2.1237322e-06, %v2450_v11  ;;  %v866_v19 = vmul.f32 3.8918573e-05, %v2450_v11  ;;  %v1135_v21 = vld [vmem:[#allocation5 + $0x230] sm:$0xff] }
 0x173   :  { %v837_v24 = vmul.f32 %v2452_v38, %v2435_v54  ;;  %vm842_vm8 = vweird.f32 %v2452_v38  ;;  %1317 = vmatpush.msrb.mxu1 %v1135_v21 }
 0x174   :  { %v2465_v39 = vmul.f32 0.70710677, %v2454_v22  ;;  %v2468_v49 = vmul.f32 0.70710677, %v2459_v33  ;;  %v856_v18 = vadd.f32 0.00028619796, %v855_v51  ;;  %vm2492_vm11 = vmor %vm841_vm10, %vm842_vm8 }
 0x175   :  { %v838_v4 = vsub.f32 1.0, %v837_v24  ;;  %v867_v30 = vadd.f32 0.001143296, %v866_v19 }
 0x176   :  { %v973_v32 = vmul.f32 %v2465_v39, %v2465_v39  ;;  %v933_v45 = vmul.f32 %v2468_v49, %v2468_v49  ;;  %v857_v42 = vmul.f32 %v856_v18, %v2450_v11  ;;  %v1132_v18 = vld [vmem:[#allocation5 + $0x218] sm:$0xff] }
 0x177   :  { %v839_v37 = vmul.f32 %v2452_v38, %v838_v4  ;;  %v868_v20 = vmul.f32 %v867_v30, %v2450_v11  ;;  %v1194_v4 = vld [vmem:[#allocation5 + $0x408] sm:$0xff]  ;;  %1318 = vmatpush.msrb.mxu1 %v1132_v18  ;;  %v1179_v18 = vld [vmem:[#allocation5 + $0x390] sm:$0xff] }
 0x178   :  { %v2483_v43 = vmin.f32 %v973_v32, 16.0  ;;  %v2487_v17 = vmin.f32 %v933_v45, 16.0  ;;  %v858_v58 = vadd.f32 0.0036580483, %v857_v42  ;;  %1267 = vmatpush.msra.mxu3 %v1194_v4 }
 0x179   :  { %v840_v6 = vadd.f32 %v2452_v38, %v839_v37  ;;  %v869_v44 = vadd.f32 0.014752088, %v868_v20  ;;  %v749_v57 = vpop.f32.mrf.mxu2  ;;  %1319 = vmatpush.msrb.mxu1 %v1129_v41  ;;  %v1114_v41 = vld [vmem:[#allocation5 + $0x188] sm:$0xff] }
 0x17a   :  { %v975_v54 = vmul.f32 2.1237322e-06, %v2483_v43  ;;  %v986_v62 = vmul.f32 3.8918573e-05, %v2483_v43  ;;  %v935_v27 = vmul.f32 2.1237322e-06, %v2487_v17  ;;  %v859_v7 = vmul.f32 %v858_v58, %v2450_v11  ;;  %1268 = vmatpush.msra.mxu3 %v1191_v35 }
 0x17b   :  { %v844_v3 = vsel %vm2492_vm11, %v2452_v38, %v840_v6  ;;  %v946_v5 = vmul.f32 3.8918573e-05, %v2487_v17  ;;  %v870_v12 = vmul.f32 %v869_v44, %v2450_v11  ;;  %v750_v38 = vadd.f32 %v749_v57, %v590_v31  ;;  %v1126_v57 = vld [vmem:[#allocation5 + $0x1e8] sm:$0xff] }
 0x17c   :  { %v849_v9 = vsel %vm2478_vm9, %v848_v15, %v844_v3  ;;  %v976_v14 = vadd.f32 0.00028619796, %v975_v54  ;;  %v936_v24 = vadd.f32 0.00028619796, %v935_v27  ;;  %v860_v51 = vadd.f32 0.05243302, %v859_v7  ;;  %1269 = vmatpush.msra.mxu3 %v1188_v53  ;;  %1320 = vmatpush.msrb.mxu1 %v1126_v57 }
 0x17d   :  { %v850_v40 = vmul.f32 %v849_v9, %v825_v63  ;;  %v947_v47 = vadd.f32 0.001143296, %v946_v5  ;;  %v871_v60 = vadd.f32 0.112945676, %v870_v12  ;;  %v987_v56 = vadd.f32 0.001143296, %v986_v62  ;;  %v775_v9 = vpop.f32.mrf.mxu3  ;;  %v798_v12 = vpop.f32.mrf.mxu0 }
 0x17e   :  { %v977_v19 = vmul.f32 %v976_v14, %v2483_v43  ;;  %v937_v30 = vmul.f32 %v936_v24, %v2487_v17  ;;  %v773_v48 = vadd.f32 %v772_v36, %v750_v38  ;;  %v861_v13 = vmul.f32 %v860_v51, %v2450_v11  ;;  %v1148_v54 = vld [vmem:[#allocation5 + $0x298] sm:$0xff]  ;;  %v1185_v36 = vld [vmem:[#allocation5 + $0x3c0] sm:$0xff]  ;;  %1321 = vmatpush.msrb.mxu1 %v1123_v26 }
 0x17f   :  { %v948_v32 = vmul.f32 %v947_v47, %v2487_v17  ;;  %v1839_v37 = vclamps-f32 %v850_v40, 1.0  ;;  %v872_v45 = vmul.f32 %v871_v60, %v2450_v11  ;;  %v988_v25 = vmul.f32 %v987_v56, %v2483_v43  ;;  %v1116_v62 = vld [vmem:[#allocation5 + $0x198] sm:$0xff]  ;;  %1382 = vmatpush.msra.mxu0 %v1148_v54  ;;  %v1113_v38 = vld [vmem:[#allocation5 + $0x180] sm:$0xff]  ;;  %1270 = vmatpush.msra.mxu3 %v1185_v36  ;;  %v1182_v40 = vld [vmem:[#allocation5 + $0x3a8] sm:$0xff] }
 0x180   :  { %v978_v42 = vadd.f32 0.0036580483, %v977_v19  ;;  %v938_v15 = vadd.f32 0.0036580483, %v937_v30  ;;  %v2520_v44 = vadd.f32 %v795_v8, %v773_v48  ;;  %1254 = vmatpush.msra.mxu2 %v1116_v62  ;;  %v862_v14 = vadd.f32 0.18741608, %v861_v13 }
 0x181   :  { %v949_v20 = vadd.f32 0.014752088, %v948_v32  ;;  %v873_v6 = vadd.f32 0.4994258, %v872_v45  ;;  %v989_v52 = vadd.f32 0.014752088, %v988_v25  ;;  %v752_v46 = vpop.f32.mrf.mxu2  ;;  %1383 = vmatpush.msra.mxu0 %v1145_v2  ;;  %1271 = vmatpush.msra.mxu3 %v1182_v40 }
 0x182   :  { %v979_v58 = vmul.f32 %v978_v42, %v2483_v43  ;;  %v939_v0 = vmul.f32 %v938_v15, %v2487_v17  ;;  %v753_v61 = vadd.f32 %v752_v46, %v590_v31  ;;  %v1053_v3 = vadd.f32 1.0, %v1839_v37  ;;  %1255 = vmatpush.msra.mxu2 %v1113_v38  ;;  %v1120_v51 = vld [vmem:[#allocation5 + $0x1b8] sm:$0xff]  ;;  %v1207_v60 = vld [vmem:[#allocation5 + $0x470] sm:$0xff]  ;;  %v1142_v19 = vld [vmem:[#allocation5 + $0x268] sm:$0xff] }
 0x183   :  { %v950_v63 = vmul.f32 %v949_v20, %v2487_v17  ;;  %v874_v27 = vmul.f32 %v873_v6, %v2450_v11  ;;  %v990_v7 = vmul.f32 %v989_v52, %v2483_v43  ;;  %v2530_v1 = vmul.f32 0.70710677, %v2520_v44  ;;  %1322 = vmatpush.msrb.mxu1 %v1120_v51  ;;  %v1117_v30 = vld [vmem:[#allocation5 + $0x1a0] sm:$0xff]  ;;  %v1204_v32 = vld [vmem:[#allocation5 + $0x458] sm:$0xff]  ;;  %1384 = vmatpush.msra.mxu0 %v1142_v19  ;;  %v1139_v37 = vld [vmem:[#allocation5 + $0x250] sm:$0xff] }
 0x184   :  { %v980_v5 = vadd.f32 0.05243302, %v979_v58  ;;  %v940_v31 = vadd.f32 0.05243302, %v939_v0  ;;  %v776_v10 = vadd.f32 %v775_v9, %v753_v61  ;;  %v2532_v56 = vmul.f32 %v1053_v3, %v801_v28  ;;  %1332 = vmatpush.msrb.mxu2 %v1207_v60  ;;  %1272 = vmatpush.msra.mxu3 %v1179_v18  ;;  %v1176_v25 = vld [vmem:[#allocation5 + $0x378] sm:$0xff]  ;;  %v1201_v48 = vld [vmem:[#allocation5 + $0x440] sm:$0xff] }
 0x185   :  { %v951_v8 = vadd.f32 0.112945676, %v950_v63  ;;  %v2525_v21 = vadd.f32 1.0, %v874_v27  ;;  %v991_v23 = vadd.f32 0.112945676, %v990_v7  ;;  %v893_v42 = vmul.f32 %v2530_v1, %v2530_v1  ;;  %1323 = vmatpush.msrb.mxu1 %v1117_v30  ;;  %1385 = vmatpush.msra.mxu0 %v1139_v37  ;;  %v1136_v53 = vld [vmem:[#allocation5 + $0x238] sm:$0xff] }
 0x186   :  { %v941_v24 = vmul.f32 %v940_v31, %v2487_v17  ;;  %v2535_v4 = vadd.f32 %v798_v12, %v776_v10  ;;  %v981_v34 = vmul.f32 %v980_v5, %v2483_v43  ;;  %v863_v29 = vmul.f32 %v862_v14, %v2450_v11  ;;  %1333 = vmatpush.msrb.mxu2 %v1204_v32  ;;  %v1208_v52 = vld [vmem:[#allocation5 + $0x478] sm:$0xff]  ;;  %v1173_v46 = vld [vmem:[#allocation5 + $0x360] sm:$0xff]  ;;  %v1198_v61 = vld [vmem:[#allocation5 + $0x428] sm:$0xff] }
 0x187   :  { %v952_v47 = vmul.f32 %v951_v8, %v2487_v17  ;;  %1900 = vrcp.f32 %v2525_v21  ;;  %v992_v35 = vmul.f32 %v991_v23, %v2483_v43  ;;  %v885_v15 = vand.u32 2147483647, %v2525_v21  ;;  %1233 = vmatmul.f32.vlgmr.msra.gmra.mxu1 %v2532_v56  ;;  %1273 = vmatpush.msra.mxu3 %v1176_v25  ;;  %v1133_v57 = vld [vmem:[#allocation5 + $0x220] sm:$0xff]  ;;  %v1170_v36 = vld [vmem:[#allocation5 + $0x348] sm:$0xff]  ;;  %v1195_v2 = vld [vmem:[#allocation5 + $0x410] sm:$0xff] }
 0x188   :  { %v942_v45 = vadd.f32 0.18741608, %v941_v24  ;;  %v887_v13 = vand.u32 2147483648, %v2525_v21  ;;  %v2545_v6 = vmin.f32 %v893_v42, 16.0  ;;  %v2548_v58 = vmul.f32 0.70710677, %v2535_v4  ;;  %1302 = vmatmul.f32.vlgmr.msrb.gmra.mxu0 %v2532_v56  ;;  %1324 = vmatpush.msrb.mxu1 %v1114_v41 }
 0x189   :  { %v953_v16 = vadd.f32 0.4994258, %v952_v47  ;;  %v993_v20 = vadd.f32 0.4994258, %v992_v35  ;;  %v982_v0 = vadd.f32 0.18741608, %v981_v34  ;;  %1334 = vmatpush.msrb.mxu2 %v1201_v48  ;;  %1386 = vmatpush.msra.mxu0 %v1136_v53  ;;  %vm881_vm14 = vweird.f32 %v2525_v21 }
 0x18a   :  { %v943_v62 = vmul.f32 %v942_v45, %v2487_v17  ;;  %v895_v3 = vmul.f32 2.1237322e-06, %v2545_v6  ;;  %v906_v27 = vmul.f32 3.8918573e-05, %v2545_v6  ;;  %v1013_v5 = vmul.f32 %v2548_v58, %v2548_v58  ;;  %v1205_v7 = vld [vmem:[#allocation5 + $0x460] sm:$0xff]  ;;  %1401 = vmatpush.msra.mxu1 %v1208_v52  ;;  %1274 = vmatpush.msra.mxu3 %v1173_v46  ;;  %v1130_v28 = vld [vmem:[#allocation5 + $0x208] sm:$0xff] }
 0x18b   :  { %v954_v55 = vmul.f32 %v953_v16, %v2487_v17  ;;  %v994_v63 = vmul.f32 %v993_v20, %v2483_v43  ;;  %v864_v26 = vadd.f32 1.1283791, %v863_v29  ;;  %v2564_v17 = vmul.f32 0.5, %v2437_v50  ;;  %1335 = vmatpush.msrb.mxu2 %v1198_v61  ;;  %1387 = vmatpush.msra.mxu0 %v1133_v57  ;;  %v1202_v12 = vld [vmem:[#allocation5 + $0x448] sm:$0xff]  ;;  %v1167_v38 = vld [vmem:[#allocation5 + $0x330] sm:$0xff]  ;;  %v1192_v14 = vld [vmem:[#allocation5 + $0x3f8] sm:$0xff] }
 0x18c   :  { %vm2568_vm12 = vcmp.eq.f32.partialorder %v885_v15, 8.507059e+37  ;;  %v2572_v9 = vor.u32 1.1754944e-38, %v887_v13  ;;  %v983_v23 = vmul.f32 %v982_v0, %v2483_v43  ;;  %v896_v50 = vadd.f32 0.00028619796, %v895_v3  ;;  %1402 = vmatpush.msra.mxu1 %v1205_v7  ;;  %1275 = vmatpush.msra.mxu3 %v1170_v36  ;;  %v1127_v24 = vld [vmem:[#allocation5 + $0x1f0] sm:$0xff]  ;;  %v1164_v18 = vld [vmem:[#allocation5 + $0x318] sm:$0xff] }
 0x18d   :  { %v2551_v11 = vadd.f32 1.0, %v954_v55  ;;  %v2555_v54 = vpop.eup %1900  ;;  %v2575_v10 = vadd.f32 1.0, %v994_v63  ;;  %v907_v40 = vadd.f32 0.001143296, %v906_v27  ;;  %v944_v47 = vadd.f32 1.1283791, %v943_v62  ;;  %1336 = vmatpush.msrb.mxu2 %v1195_v2  ;;  %1388 = vmatpush.msra.mxu0 %v1130_v28 }
 0x18e   :  { %v877_v31 = vmul.f32 %v2555_v54, %v2525_v21  ;;  %v2577_v60 = vmin.f32 %v1013_v5, 16.0  ;;  %v1199_v19 = vld [vmem:[#allocation5 + $0x430] sm:$0xff]  ;;  %vm882_vm13 = vweird.f32 %v2555_v54  ;;  %1403 = vmatpush.msra.mxu1 %v1202_v12  ;;  %1276 = vmatpush.msra.mxu3 %v1167_v38  ;;  %v1189_v43 = vld [vmem:[#allocation5 + $0x3e0] sm:$0xff]  ;;  %v1124_v16 = vld [vmem:[#allocation5 + $0x1d8] sm:$0xff]  ;;  %v897_v35 = vmul.f32 %v896_v50, %v2545_v6 }
 0x18f   :  { %1902 = vrcp.f32 %v2551_v11  ;;  %v965_v30 = vand.u32 2147483647, %v2551_v11  ;;  %v967_v32 = vand.u32 2147483648, %v2551_v11  ;;  %v908_v37 = vmul.f32 %v907_v40, %v2545_v6  ;;  %1337 = vmatpush.msrb.mxu2 %v1192_v14  ;;  %1389 = vmatpush.msra.mxu0 %v1127_v24  ;;  %v1196_v42 = vld [vmem:[#allocation5 + $0x418] sm:$0xff]  ;;  %v1161_v25 = vld [vmem:[#allocation5 + $0x300] sm:$0xff]  ;;  %v1186_v20 = vld [vmem:[#allocation5 + $0x3c8] sm:$0xff] }
 0x190   :  { %v878_v51 = vsub.f32 1.0, %v877_v31  ;;  %1904 = vrcp.f32 %v2575_v10  ;;  %v1015_v45 = vmul.f32 2.1237322e-06, %v2577_v60  ;;  %v865_v55 = vmul.f32 %v864_v26, %v2444_v59  ;;  %1404 = vmatpush.msra.mxu1 %v1199_v19  ;;  %1277 = vmatpush.msra.mxu3 %v1164_v18  ;;  %v1112_v48 = vld [vmem:[#allocation5 + $0x178] sm:$0xff]  ;;  %v1121_v59 = vld [vmem:[#allocation5 + $0x1c0] sm:$0xff]  ;;  %v1183_v63 = vld [vmem:[#allocation5 + $0x3b0] sm:$0xff] }
 0x191   :  { %v2591_v29 = vadd.f32 1.1283791, %v983_v23  ;;  %v1026_v15 = vmul.f32 3.8918573e-05, %v2577_v60  ;;  %v2595_v53 = vmul.f32 %v944_v47, %v2468_v49  ;;  %v898_v46 = vadd.f32 0.0036580483, %v897_v35  ;;  %1338 = vmatpush.msrb.mxu2 %v1189_v43  ;;  %1390 = vmatpush.msra.mxu0 %v1124_v16  ;;  %vm2605_vm0 = vmor %vm881_vm14, %vm882_vm13 }
 0x192   :  { %v879_v34 = vmul.f32 %v2555_v54, %v878_v51  ;;  %v1193_v0 = vld [vmem:[#allocation5 + $0x400] sm:$0xff]  ;;  %vm961_vm15 = vweird.f32 %v2551_v11  ;;  %v909_v61 = vadd.f32 0.014752088, %v908_v37  ;;  %v1016_v57 = vadd.f32 0.00028619796, %v1015_v45  ;;  %1405 = vmatpush.msra.mxu1 %v1196_v42  ;;  %1278 = vmatpush.msra.mxu3 %v1161_v25  ;;  %v1118_v36 = vld [vmem:[#allocation5 + $0x1a8] sm:$0xff] }
 0x193   :  { %v1027_v62 = vadd.f32 0.001143296, %v1026_v15  ;;  %vm2609_vm1 = vcmp.eq.f32.partialorder %v965_v30, 8.507059e+37  ;;  %v968_v5 = vor.u32 1.1754944e-38, %v967_v32  ;;  %1339 = vmatpush.msrb.mxu2 %v1186_v20  ;;  %v1109_v21 = vld [vmem:[#allocation5 + $0x160] sm:$0xff]  ;;  %1391 = vmatpush.msra.mxu0 %v1121_v59  ;;  %v1190_v38 = vld [vmem:[#allocation5 + $0x3e8] sm:$0xff]  ;;  %vm1001_vm3 = vweird.f32 %v2575_v10 }
 0x194   :  { %v880_v52 = vadd.f32 %v2555_v54, %v879_v34  ;;  %1355 = vmatpush.msrb.mxu3 %v1112_v48  ;;  %v910_v28 = vmul.f32 %v909_v61, %v2545_v6  ;;  %v1017_v31 = vmul.f32 %v1016_v57, %v2577_v60  ;;  %v1180_v14 = vld [vmem:[#allocation5 + $0x398] sm:$0xff]  ;;  %1406 = vmatpush.msra.mxu1 %v1193_v0  ;;  %v1106_v8 = vld [vmem:[#allocation5 + $0x148] sm:$0xff]  ;;  %v1187_v51 = vld [vmem:[#allocation5 + $0x3d0] sm:$0xff]  ;;  %v1005_v35 = vand.u32 2147483647, %v2575_v10 }
 0x195   :  { %v2587_v41 = vpop.eup %1902  ;;  %v1028_v12 = vmul.f32 %v1027_v62, %v2577_v60  ;;  %1340 = vmatpush.msrb.mxu2 %v1183_v63  ;;  %v899_v40 = vmul.f32 %v898_v46, %v2545_v6  ;;  %1392 = vmatpush.msra.mxu0 %v1118_v36  ;;  %v1177_v19 = vld [vmem:[#allocation5 + $0x380] sm:$0xff]  ;;  %v1103_v16 = vld [vmem:[#allocation5 + $0x130] sm:$0xff]  ;;  %v1007_v37 = vand.u32 2147483648, %v2575_v10  ;;  %v1184_v42 = vld [vmem:[#allocation5 + $0x3b8] sm:$0xff] }
 0x196   :  { %v957_v13 = vmul.f32 %v2587_v41, %v2551_v11  ;;  %v884_v7 = vsel %vm2605_vm0, %v2555_v54, %v880_v52  ;;  %v2616_v26 = vpop.eup %1904  ;;  %vm962_vm2 = vweird.f32 %v2587_v41  ;;  %v911_v24 = vadd.f32 0.112945676, %v910_v28  ;;  %1356 = vmatpush.msrb.mxu3 %v1109_v21  ;;  %1407 = vmatpush.msra.mxu1 %v1190_v38  ;;  %v1174_v25 = vld [vmem:[#allocation5 + $0x368] sm:$0xff]  ;;  %v1100_v48 = vld [vmem:[#allocation5 + $0x118] sm:$0xff]  ;;  %v1181_v0 = vld [vmem:[#allocation5 + $0x3a0] sm:$0xff] }
 0x197   :  { %v889_v2 = vsel %vm2568_vm12, %v2572_v9, %v884_v7  ;;  %v997_v50 = vmul.f32 %v2616_v26, %v2575_v10  ;;  %v1115_v9 = vld [vmem:[#allocation5 + $0x190] sm:$0xff]  ;;  %v1018_v47 = vadd.f32 0.0036580483, %v1017_v31  ;;  %v1029_v43 = vadd.f32 0.014752088, %v1028_v12  ;;  %1341 = vmatpush.msrb.mxu2 %v1180_v14  ;;  %vm2635_vm4 = vmor %vm961_vm15, %vm962_vm2  ;;  %v1097_v62 = vld [vmem:[#allocation5 + $0x100] sm:$0xff] }
 0x198   :  { %v958_v3 = vsub.f32 1.0, %v957_v13  ;;  %v890_v23 = vmul.f32 %v889_v2, %v865_v55  ;;  %vm1002_vm5 = vweird.f32 %v2616_v26  ;;  %v912_v45 = vmul.f32 %v911_v24, %v2545_v6  ;;  %1357 = vmatpush.msrb.mxu3 %v1106_v8  ;;  %1393 = vmatpush.msra.mxu0 %v1115_v9  ;;  %v1171_v57 = vld [vmem:[#allocation5 + $0x350] sm:$0xff]  ;;  %v1172_v9 = vld [vmem:[#allocation5 + $0x358] sm:$0xff] }
 0x199   :  { %v998_v32 = vsub.f32 1.0, %v997_v50  ;;  %v1030_v20 = vmul.f32 %v1029_v43, %v2577_v60  ;;  %1408 = vmatpush.msra.mxu1 %v1187_v51  ;;  %1342 = vmatpush.msrb.mxu2 %v1177_v19  ;;  %v900_v52 = vadd.f32 0.05243302, %v899_v40  ;;  %v1019_v59 = vmul.f32 %v1018_v47, %v2577_v60  ;;  %vm1003_vm6 = vmor %vm1001_vm3, %vm1002_vm5  ;;  %v1175_v31 = vld [vmem:[#allocation5 + $0x370] sm:$0xff]  ;;  %v1162_v40 = vld [vmem:[#allocation5 + $0x308] sm:$0xff] }
 0x19a   :  { %v959_v54 = vmul.f32 %v2587_v41, %v958_v3  ;;  %v1840_v30 = vclamps-f32 %v890_v23, 1.0  ;;  %v913_v46 = vadd.f32 0.4994258, %v912_v45  ;;  %1358 = vmatpush.msrb.mxu3 %v1103_v16  ;;  %v985_v3 = vmul.f32 %v2591_v29, %v2465_v39  ;;  %v1168_v39 = vld [vmem:[#allocation5 + $0x338] sm:$0xff]  ;;  %v1094_v29 = vld [vmem:[#allocation5 + $0xe8] sm:$0xff]  ;;  %v1091_v23 = vld [vmem:[#allocation5 + $0xd0] sm:$0xff] }
 0x19b   :  { %v999_v15 = vmul.f32 %v2616_v26, %v998_v32  ;;  %v1031_v61 = vadd.f32 0.112945676, %v1030_v20  ;;  %1409 = vmatpush.msra.mxu1 %v1184_v42  ;;  %1343 = vmatpush.msrb.mxu2 %v1174_v25  ;;  %v1008_v27 = vor.u32 1.1754944e-38, %v1007_v37  ;;  %vm1006_vm7 = vcmp.eq.f32.partialorder %v1005_v35, 8.507059e+37  ;;  %v1085_v43 = vld [vmem:[#allocation5 + $0xa0] sm:$0xff]  ;;  %v1166_v16 = vld [vmem:[#allocation5 + $0x328] sm:$0xff] }
 0x19c   :  { %v960_v18 = vadd.f32 %v2587_v41, %v959_v54  ;;  %v1054_v55 = vadd.f32 1.0, %v1840_v30  ;;  %1359 = vmatpush.msrb.mxu3 %v1100_v48  ;;  %v901_v10 = vmul.f32 %v900_v52, %v2545_v6  ;;  %v1020_v28 = vadd.f32 0.05243302, %v1019_v59  ;;  %v1165_v54 = vld [vmem:[#allocation5 + $0x320] sm:$0xff]  ;;  %v1082_v45 = vld [vmem:[#allocation5 + $0x88] sm:$0xff] }
 0x19d   :  { %v1000_v49 = vadd.f32 %v2616_v26, %v999_v15  ;;  %v1032_v7 = vmul.f32 %v1031_v61, %v2577_v60  ;;  %1410 = vmatpush.msra.mxu1 %v1181_v0  ;;  %1344 = vmatpush.msrb.mxu2 %v1171_v57  ;;  %v805_v30 = vmul.f32 0.5, %v2454_v22 }
 0x19e   :  { %v964_v11 = vsel %vm2635_vm4, %v2587_v41, %v960_v18  ;;  %v2653_v41 = vmul.f32 %v1054_v55, %v2564_v17  ;;  %v1178_v17 = vld [vmem:[#allocation5 + $0x388] sm:$0xff]  ;;  %1360 = vmatpush.msrb.mxu3 %v1097_v62  ;;  %v902_v24 = vadd.f32 0.18741608, %v901_v10  ;;  %v1021_v51 = vmul.f32 %v1020_v28, %v2577_v60  ;;  %v1169_v18 = vld [vmem:[#allocation5 + $0x340] sm:$0xff]  ;;  %v1079_v55 = vld [vmem:[#allocation5 + $0x70] sm:$0xff] }
 0x19f   :  { %v969_v13 = vsel %vm2609_vm1, %v968_v5, %v964_v11  ;;  %v1004_v5 = vsel %vm1003_vm6, %v2616_v26, %v1000_v49  ;;  %v804_v26 = vmul.f32 0.5, %v2459_v33  ;;  %v1033_v38 = vadd.f32 0.4994258, %v1032_v7  ;;  %1411 = vmatpush.msra.mxu1 %v1178_v17  ;;  %1345 = vmatpush.msrb.mxu2 %v1168_v39  ;;  %v1088_v33 = vld [vmem:[#allocation5 + $0xb8] sm:$0xff]  ;;  %v1163_v11 = vld [vmem:[#allocation5 + $0x310] sm:$0xff] }
 0x1a0   :  { %v970_v63 = vmul.f32 %v969_v13, %v2595_v53  ;;  %v914_v53 = vmul.f32 %v913_v46, %v2545_v6  ;;  %1256 = vmatmul.f32.vlgmr.msra.gmra.mxu2 %v2653_v41  ;;  %v1009_v36 = vsel %vm1006_vm7, %v1008_v27, %v1004_v5  ;;  %1361 = vmatpush.msrb.mxu3 %v1094_v29  ;;  %v1022_v25 = vadd.f32 0.18741608, %v1021_v51  ;;  %v1076_v46 = vld [vmem:[#allocation5 + $0x58] sm:$0xff]  ;;  %v1067_v7 = vld [vmem:[#allocation5 + $0x10] sm:$0xff] }
 0x1a1   :  { %v1010_v12 = vmul.f32 %v1009_v36, %v985_v3  ;;  %v1034_v50 = vmul.f32 %v1033_v38, %v2577_v60  ;;  %1412 = vmatpush.msra.mxu1 %v1175_v31  ;;  %1346 = vmatpush.msrb.mxu2 %v1165_v54  ;;  %v903_v35 = vmul.f32 %v902_v24, %v2545_v6  ;;  %v803_v10 = vmul.f32 0.5, %v2520_v44 }
 0x1a2   :  { %v1842_v21 = vclamps-f32 %v970_v63, 1.0  ;;  %v2667_v2 = vadd.f32 1.0, %v914_v53  ;;  %1362 = vmatpush.msrb.mxu3 %v1091_v23  ;;  %v1023_v52 = vmul.f32 %v1022_v25, %v2577_v60  ;;  %v1073_v63 = vld [vmem:[#allocation5 + $0x40] sm:$0xff] }
 0x1a3   :  { %v1843_v47 = vclamps-f32 %v1010_v12, 1.0  ;;  %v2675_v19 = vadd.f32 1.0, %v1034_v50  ;;  %1413 = vmatpush.msra.mxu1 %v1172_v9  ;;  %1347 = vmatpush.msrb.mxu2 %v1162_v40  ;;  %v904_v15 = vadd.f32 1.1283791, %v903_v35  ;;  %v2702_v50 = vld [vmem:[%s2891_s6] sm:$0x7] }
 0x1a4   :  { %v1056_v14 = vadd.f32 1.0, %v1842_v21  ;;  %1906 = vrcp.f32 %v2667_v2  ;;  %1363 = vmatpush.msrb.mxu3 %v1088_v33  ;;  %v927_v20 = vand.u32 2147483648, %v2667_v2  ;;  %v925_v6 = vand.u32 2147483647, %v2667_v2  ;;  %v1703_v33 = vld [vmem:[#allocation7 + $0x78] sm:$0xff] }
 0x1a5   :  { %v1057_v32 = vadd.f32 1.0, %v1843_v47  ;;  %1908 = vrcp.f32 %v2675_v19  ;;  %1414 = vmatpush.msra.mxu1 %v1169_v18  ;;  %vm921_vm9 = vweird.f32 %v2667_v2  ;;  %v905_v49 = vmul.f32 %v904_v15, %v2530_v1  ;;  %1740 = vmatpush.msra.mxu2 %v1703_v33  ;;  %v1716_v15 = vld [vmem:[#allocation7 + $0xe0] sm:$0xff] }
 0x1a6   :  { %v2672_v8 = vmul.f32 %v1056_v14, %v804_v26  ;;  %1364 = vmatpush.msrb.mxu3 %v1085_v43  ;;  %v928_v61 = vor.u32 1.1754944e-38, %v927_v20  ;;  %vm926_vm11 = vcmp.eq.f32.partialorder %v925_v6, 8.507059e+37  ;;  %v1024_v60 = vadd.f32 1.1283791, %v1023_v52  ;;  %v1718_v43 = vld [vmem:[#allocation7 + $0xf0] sm:$0xff] }
 0x1a7   :  { %v1063_v37 = vmul.f32 %v1057_v32, %v805_v30  ;;  %1415 = vmatpush.msra.mxu1 %v1166_v16  ;;  %v1047_v3 = vand.u32 2147483648, %v2675_v19  ;;  %v1045_v17 = vand.u32 2147483647, %v2675_v19  ;;  %vm1041_vm13 = vweird.f32 %v2675_v19  ;;  %v1701_v32 = vld [vmem:[#allocation7 + $0x68] sm:$0xff]  ;;  %v1698_v52 = vld [vmem:[#allocation7 + $0x50] sm:$0xff] }
 0x1a8   :  { %1236 = vmatmul.f32.gmra.mxu1 %v2672_v8  ;;  %1305 = vmatmul.f32.gmra.mxu0 %v2672_v8  ;;  %v1025_v29 = vmul.f32 %v1024_v60, %v2548_v58  ;;  %v806_v14 = vmul.f32 0.5, %v2535_v4  ;;  %v1211_v4 = vperm.slane %v2702_v50, 0  ;;  %v1212_v40 = vperm.slane %v2702_v50, 1 }
 0x1a9   :  { %1259 = vmatmul.f32.gmra.mxu2 %v1063_v37  ;;  %1365 = vmatpush.msrb.mxu3 %v1082_v45  ;;  %v1048_v39 = vor.u32 1.1754944e-38, %v1047_v3  ;;  %vm1046_vm15 = vcmp.eq.f32.partialorder %v1045_v17, 8.507059e+37  ;;  %v1700_v45 = vld [vmem:[#allocation7 + $0x60] sm:$0xff] }
 0x1aa   :  { %v1907_v34 = vpop.eup %1906  ;;  %1416 = vmatpush.msra.mxu1 %v1163_v11 }
 0x1ab   :  { %v917_v42 = vmul.f32 %v1907_v34, %v2667_v2  ;;  %v1909_v48 = vpop.eup %1908  ;;  %vm922_vm8 = vweird.f32 %v1907_v34  ;;  %1366 = vmatpush.msrb.mxu3 %v1079_v55  ;;  %v1699_v55 = vld [vmem:[#allocation7 + $0x58] sm:$0xff] }
 0x1ac   :  { %v1037_v59 = vmul.f32 %v1909_v48, %v2675_v19  ;;  %vm923_vm10 = vmor %vm921_vm9, %vm922_vm8  ;;  %vm1042_vm12 = vweird.f32 %v1909_v48  ;;  %v1719_v19 = vld [vmem:[#allocation7 + $0xf8] sm:$0xff] }
 0x1ad   :  { %v918_v22 = vsub.f32 1.0, %v917_v42  ;;  %1367 = vmatpush.msrb.mxu3 %v1076_v46  ;;  %vm1043_vm14 = vmor %vm1041_vm13, %vm1042_vm12  ;;  %v1717_v42 = vld [vmem:[#allocation7 + $0xe8] sm:$0xff]  ;;  %v1715_v46 = vld [vmem:[#allocation7 + $0xd8] sm:$0xff] }
 0x1ae   :  { %v1038_v57 = vsub.f32 1.0, %v1037_v59 }
 0x1af   :  { %v919_v13 = vmul.f32 %v1907_v34, %v918_v22  ;;  %1368 = vmatpush.msrb.mxu3 %v1073_v63 }
 0x1b0   :  { %1325 = vmatmul.f32.vlgmr.msrb.gmra.mxu1 %v2653_v41  ;;  %1394 = vmatmul.f32.vlgmr.msra.gmra.mxu0 %v2653_v41  ;;  %v1070_v41 = vld [vmem:[#allocation5 + $0x28] sm:$0xff]  ;;  %v1039_v53 = vmul.f32 %v1909_v48, %v1038_v57  ;;  %v1714_v57 = vld [vmem:[#allocation7 + $0xd0] sm:$0xff] }
 0x1b1   :  { %v920_v0 = vadd.f32 %v1907_v34, %v919_v13  ;;  %1369 = vmatpush.msrb.mxu3 %v1070_v41 }
 0x1b2   :  { %v1040_v21 = vadd.f32 %v1909_v48, %v1039_v53 }
 0x1b3   :  { %v924_v62 = vsel %vm923_vm10, %v1907_v34, %v920_v0  ;;  %1370 = vmatpush.msrb.mxu3 %v1067_v7 }
 0x1b4   :  { %v929_v27 = vsel %vm926_vm11, %v928_v61, %v924_v62  ;;  %v1044_v36 = vsel %vm1043_vm14, %v1909_v48, %v1040_v21  ;;  %v1697_v61 = vld [vmem:[#allocation7 + $0x48] sm:$0xff]  ;;  %v1696_v21 = vld [vmem:[#allocation7 + $0x40] sm:$0xff] }
 0x1b5   :  { %v930_v5 = vmul.f32 %v929_v27, %v905_v49  ;;  %v1049_v28 = vsel %vm1046_vm15, %v1048_v39, %v1044_v36 }
 0x1b6   :  { %v1050_v31 = vmul.f32 %v1049_v28, %v1025_v29 }
 0x1b7   :  { %v1841_v1 = vclamps-f32 %v930_v5, 1.0 }
 0x1b8   :  { %1328 = vmatmul.f32.gmra.mxu1 %v1063_v37  ;;  %1397 = vmatmul.f32.gmra.mxu0 %v1063_v37  ;;  %v1844_v12 = vclamps-f32 %v1050_v31, 1.0 }
 0x1b9   :  { %v1055_v2 = vadd.f32 1.0, %v1841_v1  ;;  %v1713_v1 = vld [vmem:[#allocation7 + $0xc8] sm:$0xff] }
 0x1ba   :  { %v1058_v38 = vadd.f32 1.0, %v1844_v12 }
 0x1bb   :  { %v1061_v26 = vmul.f32 %v1055_v2, %v803_v10 }
 0x1bc   :  { %v1064_v54 = vmul.f32 %v1058_v38, %v806_v14  ;;  %v1695_v38 = vld [vmem:[#allocation7 + $0x38] sm:$0xff]  ;;  %v1712_v14 = vld [vmem:[#allocation7 + $0xc0] sm:$0xff] }
 0x1bd   :  { %1279 = vmatmul.f32.vlgmr.msra.gmra.mxu3 %v1061_v26  ;;  %1348 = vmatmul.f32.vlgmr.msrb.gmra.mxu2 %v1061_v26 }
 0x1be   :  { %1763 = vmatpush.msra.mxu3 %v1719_v19  ;;  %v1710_v19 = vld [vmem:[#allocation7 + $0xb0] sm:$0xff] }
 0x1c0   :  { %1417 = vmatmul.f32.vlgmr.msra.gmra.mxu1 %v1061_v26  ;;  %1764 = vmatpush.msra.mxu3 %v1718_v43 }
 0x1c2   :  { %1765 = vmatpush.msra.mxu3 %v1717_v42  ;;  %v1709_v42 = vld [vmem:[#allocation7 + $0xa8] sm:$0xff] }
 0x1c4   :  { %1766 = vmatpush.msra.mxu3 %v1716_v15 }
 0x1c5   :  { %1282 = vmatmul.f32.gmra.mxu3 %v1064_v54  ;;  %1351 = vmatmul.f32.gmra.mxu2 %v1064_v54 }
 0x1c6   :  { %1767 = vmatpush.msra.mxu3 %v1715_v46 }
 0x1c8   :  { %1420 = vmatmul.f32.gmra.mxu1 %v1064_v54  ;;  %1768 = vmatpush.msra.mxu3 %v1714_v57  ;;  %v1694_v54 = vld [vmem:[#allocation7 + $0x30] sm:$0xff] }
 0x1ca   :  { %1769 = vmatpush.msra.mxu3 %v1713_v1 }
 0x1cc   :  { %1770 = vmatpush.msra.mxu3 %v1712_v14 }
 0x1cd   :  { %1371 = vmatmul.f32.vlgmr.msrb.gmra.mxu3 %v2532_v56 }
 0x1d5   :  { %1374 = vmatmul.f32.gmra.mxu3 %v2672_v8  ;;  %v1702_v8 = vld [vmem:[#allocation7 + $0x70] sm:$0xff] }
 0x1d6   :  { %1741 = vmatpush.msra.mxu2 %v1702_v8  ;;  %v1693_v8 = vld [vmem:[#allocation7 + $0x28] sm:$0xff] }
 0x1d8   :  { %1742 = vmatpush.msra.mxu2 %v1701_v32 }
 0x1da   :  { %1743 = vmatpush.msra.mxu2 %v1700_v45  ;;  %v1692_v45 = vld [vmem:[#allocation7 + $0x20] sm:$0xff] }
 0x1dc   :  { %1744 = vmatpush.msra.mxu2 %v1699_v55 }
 0x1de   :  { %1745 = vmatpush.msra.mxu2 %v1698_v52 }
 0x1e0   :  { %1746 = vmatpush.msra.mxu2 %v1697_v61 }
 0x1e2   :  { %1747 = vmatpush.msra.mxu2 %v1696_v21 }
 0x1e4   :  { %1748 = vmatpush.msra.mxu2 %v1695_v38 }
 0x1e6   :  { %1749 = vmatpush.msra.mxu2 %v1694_v54 }
 0x1e8   :  { %1750 = vmatpush.msra.mxu2 %v1693_v8  ;;  %v1705_v8 = vld [vmem:[#allocation7 + $0x88] sm:$0xff] }
 0x1ea   :  { %1751 = vmatpush.msra.mxu2 %v1692_v45 }
 0x204   :  { %v1234_v44 = vpop.f32.mrf.mxu1 }
 0x205   :  { %v1303_v24 = vpop.f32.mrf.mxu0  ;;  %v1235_v56 = vadd.f32 %v1234_v44, %v1211_v4 }
 0x206   :  { %v1304_v51 = vadd.f32 %v1303_v24, %v1212_v40 }
 0x223   :  { %v1257_v58 = vpop.f32.mrf.mxu2 }
 0x224   :  { %v1258_v30 = vadd.f32 %v1257_v58, %v1235_v56 }
 0x225   :  { %v1237_v23 = vpop.f32.mrf.mxu1  ;;  %v1306_v25 = vpop.f32.mrf.mxu0 }
 0x226   :  { %v1238_v20 = vadd.f32 %v1237_v23, %v1211_v4  ;;  %v1307_v59 = vadd.f32 %v1306_v25, %v1212_v40  ;;  %v1213_v23 = vperm.slane %v2702_v50, 2  ;;  %v1734_v25 = vld [vmem:[#allocation7 + $0x170] sm:$0xff] }
 0x22c   :  { %v1260_v9 = vpop.f32.mrf.mxu2 }
 0x22d   :  { %v1326_v47 = vpop.f32.mrf.mxu1  ;;  %v1261_v0 = vadd.f32 %v1260_v9, %v1238_v20  ;;  %v1711_v9 = vld [vmem:[#allocation7 + $0xb8] sm:$0xff] }
 0x22e   :  { %v1327_v18 = vadd.f32 %v1326_v47, %v1304_v51  ;;  %1771 = vmatpush.msra.mxu3 %v1711_v9 }
 0x230   :  { %1772 = vmatpush.msra.mxu3 %v1710_v19  ;;  %v1730_v19 = vld [vmem:[#allocation7 + $0x150] sm:$0xff] }
 0x232   :  { %1773 = vmatpush.msra.mxu3 %v1709_v42  ;;  %v1729_v42 = vld [vmem:[#allocation7 + $0x148] sm:$0xff] }
 0x235   :  { %v1329_v48 = vpop.f32.mrf.mxu1 }
 0x236   :  { %v1330_v62 = vadd.f32 %v1329_v48, %v1307_v59 }
 0x240   :  { %v1280_v16 = vpop.f32.mrf.mxu3  ;;  %v1349_v34 = vpop.f32.mrf.mxu2 }
 0x241   :  { %v2706_v35 = vadd.f32 %v1280_v16, %v1258_v30  ;;  %v2708_v37 = vadd.f32 %v1349_v34, %v1327_v18  ;;  %v1735_v18 = vld [vmem:[#allocation7 + $0x178] sm:$0xff]  ;;  %v1395_v30 = vpop.f32.mrf.mxu0 }
 0x242   :  { %1786 = vmatpush.msrb.mxu0 %v1735_v18  ;;  %1851 = vmatpush.msrb.mxu1 %v1735_v18 }
 0x243   :  { %v2711_v11 = vmul.f32 0.70710677, %v2706_v35  ;;  %v2714_v22 = vmul.f32 0.70710677, %v2708_v37 }
 0x244   :  { %1787 = vmatpush.msrb.mxu0 %v1734_v25  ;;  %1852 = vmatpush.msrb.mxu1 %v1734_v25 }
 0x245   :  { %v1436_v13 = vmul.f32 %v2711_v11, %v2711_v11  ;;  %v1476_v6 = vmul.f32 %v2714_v22, %v2714_v22 }
 0x247   :  { %v2720_v63 = vmin.f32 %v1436_v13, 16.0  ;;  %v2722_v49 = vmin.f32 %v1476_v6, 16.0 }
 0x248   :  { %v1283_v60 = vpop.f32.mrf.mxu3  ;;  %v1352_v3 = vpop.f32.mrf.mxu2 }
 0x249   :  { %v1438_v41 = vmul.f32 2.1237322e-06, %v2720_v63  ;;  %v1449_v27 = vmul.f32 3.8918573e-05, %v2720_v63  ;;  %v1478_v53 = vmul.f32 2.1237322e-06, %v2722_v49  ;;  %v2727_v17 = vadd.f32 %v1283_v60, %v1261_v0  ;;  %v1418_v60 = vpop.f32.mrf.mxu1  ;;  %v1398_v18 = vpop.f32.mrf.mxu0 }
 0x24a   :  { %v1489_v5 = vmul.f32 3.8918573e-05, %v2722_v49  ;;  %v2730_v7 = vadd.f32 %v1352_v3, %v1330_v62 }
 0x24b   :  { %v1439_v39 = vadd.f32 0.00028619796, %v1438_v41  ;;  %v1450_v29 = vadd.f32 0.001143296, %v1449_v27  ;;  %v1479_v36 = vadd.f32 0.00028619796, %v1478_v53 }
 0x24c   :  { %v1490_v10 = vadd.f32 0.001143296, %v1489_v5  ;;  %v2733_v2 = vmul.f32 0.70710677, %v2727_v17  ;;  %v2739_v12 = vmul.f32 0.70710677, %v2730_v7 }
 0x24d   :  { %v1440_v28 = vmul.f32 %v1439_v39, %v2720_v63  ;;  %v1451_v31 = vmul.f32 %v1450_v29, %v2720_v63  ;;  %v1480_v26 = vmul.f32 %v1479_v36, %v2722_v49  ;;  %v1691_v41 = vld [vmem:[#allocation7 + $0x18] sm:$0xff]  ;;  %v1708_v27 = vld [vmem:[#allocation7 + $0xa0] sm:$0xff]  ;;  %v1733_v53 = vld [vmem:[#allocation7 + $0x168] sm:$0xff] }
 0x24e   :  { %v1491_v44 = vmul.f32 %v1490_v10, %v2722_v49  ;;  %v1556_v58 = vmul.f32 %v2733_v2, %v2733_v2  ;;  %v1596_v47 = vmul.f32 %v2739_v12, %v2739_v12  ;;  %1752 = vmatpush.msra.mxu2 %v1691_v41  ;;  %1774 = vmatpush.msra.mxu3 %v1708_v27  ;;  %v1690_v36 = vld [vmem:[#allocation7 + $0x10] sm:$0xff]  ;;  %v1707_v10 = vld [vmem:[#allocation7 + $0x98] sm:$0xff] }
 0x24f   :  { %v1441_v4 = vadd.f32 0.0036580483, %v1440_v28  ;;  %v1452_v40 = vadd.f32 0.014752088, %v1451_v31  ;;  %v1481_v24 = vadd.f32 0.0036580483, %v1480_v26  ;;  %1788 = vmatpush.msrb.mxu0 %v1733_v53  ;;  %1853 = vmatpush.msrb.mxu1 %v1733_v53 }
 0x250   :  { %v1492_v33 = vadd.f32 0.014752088, %v1491_v44  ;;  %v2747_v56 = vmin.f32 %v1556_v58, 16.0  ;;  %v1372_v51 = vpop.f32.mrf.mxu3  ;;  %v2752_v34 = vmin.f32 %v1596_v47, 16.0  ;;  %v1732_v28 = vld [vmem:[#allocation7 + $0x160] sm:$0xff]  ;;  %1753 = vmatpush.msra.mxu2 %v1690_v36  ;;  %1775 = vmatpush.msra.mxu3 %v1707_v10  ;;  %v1689_v58 = vld [vmem:[#allocation7 + $0x8] sm:$0xff] }
 0x251   :  { %v1442_v32 = vmul.f32 %v1441_v4, %v2720_v63  ;;  %v1453_v43 = vmul.f32 %v1452_v40, %v2720_v63  ;;  %v1482_v16 = vmul.f32 %v1481_v24, %v2722_v49  ;;  %v1373_v20 = vadd.f32 %v1372_v51, %v1213_v23  ;;  %1789 = vmatpush.msrb.mxu0 %v1732_v28  ;;  %v1706_v40 = vld [vmem:[#allocation7 + $0x90] sm:$0xff]  ;;  %v1731_v24 = vld [vmem:[#allocation7 + $0x158] sm:$0xff]  ;;  %v1688_v47 = vld [vmem:[#allocation7] sm:$0xff] }
 0x252   :  { %v1493_v55 = vmul.f32 %v1492_v33, %v2722_v49  ;;  %v1558_v15 = vmul.f32 2.1237322e-06, %v2747_v56  ;;  %v1569_v48 = vmul.f32 3.8918573e-05, %v2747_v56  ;;  %v1598_v0 = vmul.f32 2.1237322e-06, %v2752_v34  ;;  %1854 = vmatpush.msrb.mxu1 %v1732_v28  ;;  %1754 = vmatpush.msra.mxu2 %v1689_v58 }
 0x253   :  { %v1443_v13 = vadd.f32 0.05243302, %v1442_v32  ;;  %v1454_v6 = vadd.f32 0.112945676, %v1453_v43  ;;  %v1483_v52 = vadd.f32 0.05243302, %v1482_v16  ;;  %v1396_v61 = vadd.f32 %v1395_v30, %v1373_v20  ;;  %1776 = vmatpush.msra.mxu3 %v1706_v40  ;;  %1790 = vmatpush.msrb.mxu0 %v1731_v24 }
 0x254   :  { %v1494_v46 = vadd.f32 0.112945676, %v1493_v55  ;;  %v1559_v59 = vadd.f32 0.00028619796, %v1558_v15  ;;  %v1570_v5 = vadd.f32 0.001143296, %v1569_v48  ;;  %1855 = vmatpush.msrb.mxu1 %v1731_v24  ;;  %1755 = vmatpush.msra.mxu2 %v1688_v47  ;;  %v1421_v48 = vpop.f32.mrf.mxu1 }
 0x255   :  { %v1444_v57 = vmul.f32 %v1443_v13, %v2720_v63  ;;  %v1455_v62 = vmul.f32 %v1454_v6, %v2720_v63  ;;  %v1484_v3 = vmul.f32 %v1483_v52, %v2722_v49  ;;  %v1599_v39 = vadd.f32 0.00028619796, %v1598_v0  ;;  %v1704_v16 = vld [vmem:[#allocation7 + $0x80] sm:$0xff]  ;;  %1777 = vmatpush.msra.mxu3 %v1705_v8  ;;  %1791 = vmatpush.msrb.mxu0 %v1730_v19  ;;  %v1725_v47 = vld [vmem:[#allocation7 + $0x128] sm:$0xff] }
 0x256   :  { %v1495_v21 = vmul.f32 %v1494_v46, %v2722_v49  ;;  %v1560_v1 = vmul.f32 %v1559_v59, %v2747_v56  ;;  %v2765_v29 = vadd.f32 %v1418_v60, %v1396_v61  ;;  %1856 = vmatpush.msrb.mxu1 %v1730_v19  ;;  %v1571_v55 = vmul.f32 %v1570_v5, %v2747_v56  ;;  %v1728_v15 = vld [vmem:[#allocation7 + $0x140] sm:$0xff] }
 0x257   :  { %v1445_v31 = vadd.f32 0.18741608, %v1444_v57  ;;  %v1456_v26 = vadd.f32 0.4994258, %v1455_v62  ;;  %v1485_v38 = vadd.f32 0.18741608, %v1484_v3  ;;  %v1600_v43 = vmul.f32 %v1599_v39, %v2752_v34  ;;  %1778 = vmatpush.msra.mxu3 %v1704_v16  ;;  %1792 = vmatpush.msrb.mxu0 %v1729_v42 }
 0x258   :  { %v1496_v14 = vadd.f32 0.4994258, %v1495_v21  ;;  %v1561_v54 = vadd.f32 0.0036580483, %v1560_v1  ;;  %v1375_v44 = vpop.f32.mrf.mxu3  ;;  %v2769_v4 = vmul.f32 0.70710677, %v2765_v29  ;;  %1857 = vmatpush.msrb.mxu1 %v1729_v42 }
 0x259   :  { %v1457_v9 = vmul.f32 %v1456_v26, %v2720_v63  ;;  %v1376_v51 = vadd.f32 %v1375_v44, %v1213_v23  ;;  %v1446_v30 = vmul.f32 %v1445_v31, %v2720_v63  ;;  %v1486_v63 = vmul.f32 %v1485_v38, %v2722_v49  ;;  %1793 = vmatpush.msrb.mxu0 %v1728_v15  ;;  %v1726_v62 = vld [vmem:[#allocation7 + $0x130] sm:$0xff] }
 0x25a   :  { %v1497_v33 = vmul.f32 %v1496_v14, %v2722_v49  ;;  %v1516_v50 = vmul.f32 %v2769_v4, %v2769_v4  ;;  %v1562_v25 = vmul.f32 %v1561_v54, %v2747_v56  ;;  %v1601_v13 = vadd.f32 0.0036580483, %v1600_v43  ;;  %v1727_v49 = vld [vmem:[#allocation7 + $0x138] sm:$0xff]  ;;  %1858 = vmatpush.msrb.mxu1 %v1728_v15 }
 0x25b   :  { %v2775_v32 = vadd.f32 1.0, %v1457_v9  ;;  %v1399_v23 = vadd.f32 %v1398_v18, %v1376_v51  ;;  %v1447_v20 = vadd.f32 1.1283791, %v1446_v30  ;;  %v1487_v46 = vadd.f32 1.1283791, %v1486_v63  ;;  %1794 = vmatpush.msrb.mxu0 %v1727_v49 }
 0x25c   :  { %v2778_v45 = vadd.f32 1.0, %v1497_v33  ;;  %v2787_v6 = vmin.f32 %v1516_v50, 16.0  ;;  %v1563_v59 = vadd.f32 0.05243302, %v1562_v25  ;;  %v1572_v0 = vadd.f32 0.014752088, %v1571_v55  ;;  %1859 = vmatpush.msrb.mxu1 %v1727_v49 }
 0x25d   :  { %1910 = vrcp.f32 %v2775_v32  ;;  %v2789_v52 = vadd.f32 %v1421_v48, %v1399_v23  ;;  %v1468_v61 = vand.u32 2147483647, %v2775_v32  ;;  %v1448_v3 = vmul.f32 %v1447_v20, %v2711_v11  ;;  %1795 = vmatpush.msrb.mxu0 %v1726_v62 }
 0x25e   :  { %1912 = vrcp.f32 %v2778_v45  ;;  %v1518_v57 = vmul.f32 2.1237322e-06, %v2787_v6  ;;  %v1602_v41 = vmul.f32 %v1601_v13, %v2752_v34  ;;  %v1573_v27 = vmul.f32 %v1572_v0, %v2747_v56  ;;  %1860 = vmatpush.msrb.mxu1 %v1726_v62 }
 0x25f   :  { %v1609_v53 = vmul.f32 3.8918573e-05, %v2752_v34  ;;  %vm1464_vm0 = vweird.f32 %v2775_v32  ;;  %v1470_v1 = vand.u32 2147483648, %v2775_v32  ;;  %v2801_v39 = vmul.f32 0.70710677, %v2789_v52  ;;  %1796 = vmatpush.msrb.mxu0 %v1725_v47 }
 0x260   :  { %v1488_v11 = vmul.f32 %v1487_v46, %v2714_v22  ;;  %vm1504_vm1 = vweird.f32 %v2778_v45  ;;  %v1529_v10 = vmul.f32 3.8918573e-05, %v2787_v6  ;;  %vm2807_vm2 = vcmp.eq.f32.partialorder %v1468_v61, 8.507059e+37  ;;  %1861 = vmatpush.msrb.mxu1 %v1725_v47  ;;  %v1721_v47 = vld [vmem:[#allocation7 + $0x108] sm:$0xff] }
 0x261   :  { %v1519_v26 = vadd.f32 0.00028619796, %v1518_v57  ;;  %v1574_v38 = vadd.f32 0.112945676, %v1573_v27  ;;  %v1508_v54 = vand.u32 2147483647, %v2778_v45  ;;  %v1636_v9 = vmul.f32 %v2801_v39, %v2801_v39 }
 0x262   :  { %v1510_v22 = vand.u32 2147483648, %v2778_v45  ;;  %v1610_v44 = vadd.f32 0.001143296, %v1609_v53  ;;  %v1530_v51 = vadd.f32 0.001143296, %v1529_v10  ;;  %v1564_v19 = vmul.f32 %v1563_v59, %v2747_v56  ;;  %v1724_v10 = vld [vmem:[#allocation7 + $0x120] sm:$0xff] }
 0x263   :  { %v1911_v60 = vpop.eup %1910  ;;  %v1575_v40 = vmul.f32 %v1574_v38, %v2747_v56  ;;  %v1520_v18 = vmul.f32 %v1519_v26, %v2787_v6  ;;  %v1471_v43 = vor.u32 1.1754944e-38, %v1470_v1  ;;  %v2825_v25 = vmin.f32 %v1636_v9, 16.0  ;;  %1797 = vmatpush.msrb.mxu0 %v1724_v10  ;;  %v1723_v38 = vld [vmem:[#allocation7 + $0x118] sm:$0xff]  ;;  %1862 = vmatpush.msrb.mxu1 %v1724_v10 }
 0x264   :  { %v1913_v5 = vpop.eup %1912  ;;  %v1460_v21 = vmul.f32 %v1911_v60, %v2775_v32  ;;  %vm1465_vm3 = vweird.f32 %v1911_v60  ;;  %v1611_v33 = vmul.f32 %v1610_v44, %v2752_v34  ;;  %v1531_v23 = vmul.f32 %v1530_v51, %v2787_v6 }
 0x265   :  { %v1500_v36 = vmul.f32 %v1913_v5, %v2778_v45  ;;  %vm1505_vm4 = vweird.f32 %v1913_v5  ;;  %v1576_v30 = vadd.f32 0.4994258, %v1575_v40  ;;  %vm1466_vm5 = vmor %vm1464_vm0, %vm1465_vm3  ;;  %v1511_v63 = vor.u32 1.1754944e-38, %v1510_v22  ;;  %v1722_v22 = vld [vmem:[#allocation7 + $0x110] sm:$0xff]  ;;  %1798 = vmatpush.msrb.mxu0 %v1723_v38  ;;  %1863 = vmatpush.msrb.mxu1 %v1723_v38 }
 0x266   :  { %v1461_v28 = vsub.f32 1.0, %v1460_v21  ;;  %v1612_v50 = vadd.f32 0.014752088, %v1611_v33  ;;  %vm1506_vm6 = vmor %vm1504_vm1, %vm1505_vm4  ;;  %vm1509_vm7 = vcmp.eq.f32.partialorder %v1508_v54, 8.507059e+37  ;;  %v1521_v49 = vadd.f32 0.0036580483, %v1520_v18 }
 0x267   :  { %v1501_v14 = vsub.f32 1.0, %v1500_v36  ;;  %v1577_v55 = vmul.f32 %v1576_v30, %v2747_v56  ;;  %v1532_v0 = vadd.f32 0.014752088, %v1531_v23  ;;  %v1603_v57 = vadd.f32 0.05243302, %v1602_v41  ;;  %1799 = vmatpush.msrb.mxu0 %v1722_v22  ;;  %1864 = vmatpush.msrb.mxu1 %v1722_v22 }
 0x268   :  { %v1462_v58 = vmul.f32 %v1911_v60, %v1461_v28  ;;  %v1613_v20 = vmul.f32 %v1612_v50, %v2752_v34  ;;  %v1638_v62 = vmul.f32 2.1237322e-06, %v2825_v25  ;;  %v1565_v53 = vadd.f32 0.18741608, %v1564_v19 }
 0x269   :  { %v1502_v24 = vmul.f32 %v1913_v5, %v1501_v14  ;;  %v2831_v46 = vadd.f32 1.0, %v1577_v55  ;;  %v1522_v21 = vmul.f32 %v1521_v49, %v2787_v6  ;;  %v1425_v36 = vmul.f32 0.5, %v2708_v37  ;;  %1800 = vmatpush.msrb.mxu0 %v1721_v47  ;;  %1865 = vmatpush.msrb.mxu1 %v1721_v47 }
 0x26a   :  { %v1463_v8 = vadd.f32 %v1911_v60, %v1462_v58  ;;  %v1614_v45 = vadd.f32 0.112945676, %v1613_v20  ;;  %v1604_v31 = vmul.f32 %v1603_v57, %v2752_v34  ;;  %v1639_v26 = vadd.f32 0.00028619796, %v1638_v62 }
 0x26b   :  { %v1503_v16 = vadd.f32 %v1913_v5, %v1502_v24  ;;  %1914 = vrcp.f32 %v2831_v46  ;;  %v1566_v54 = vmul.f32 %v1565_v53, %v2747_v56  ;;  %v1523_v40 = vadd.f32 0.05243302, %v1522_v21 }
 0x26c   :  { %v1467_v42 = vsel %vm1466_vm5, %v1911_v60, %v1463_v8  ;;  %v1424_v60 = vmul.f32 0.5, %v2706_v35  ;;  %v1615_v1 = vmul.f32 %v1614_v45, %v2752_v34  ;;  %v1605_v51 = vadd.f32 0.18741608, %v1604_v31 }
 0x26d   :  { %v1472_v15 = vsel %vm2807_vm2, %v1471_v43, %v1467_v42  ;;  %v1507_v32 = vsel %vm1506_vm6, %v1913_v5, %v1503_v16  ;;  %v1649_v5 = vmul.f32 3.8918573e-05, %v2825_v25  ;;  %v1640_v8 = vmul.f32 %v1639_v26, %v2825_v25  ;;  %v1720_v43 = vld [vmem:[#allocation7 + $0x100] sm:$0xff] }
 0x26e   :  { %v1473_v48 = vmul.f32 %v1472_v15, %v1448_v3  ;;  %v1512_v13 = vsel %vm1509_vm7, %v1511_v63, %v1507_v32  ;;  %v1616_v35 = vadd.f32 0.4994258, %v1615_v1  ;;  %v1567_v18 = vadd.f32 1.1283791, %v1566_v54  ;;  %1801 = vmatpush.msrb.mxu0 %v1720_v43  ;;  %1866 = vmatpush.msrb.mxu1 %v1720_v43 }
 0x26f   :  { %v1513_v59 = vmul.f32 %v1512_v13, %v1488_v11  ;;  %v1533_v11 = vmul.f32 %v1532_v0, %v2787_v6  ;;  %v1650_v58 = vadd.f32 0.001143296, %v1649_v5  ;;  %v1524_v50 = vmul.f32 %v1523_v40, %v2787_v6 }
 0x270   :  { %v1845_v61 = vclamps-f32 %v1473_v48, 1.0  ;;  %v1617_v37 = vmul.f32 %v1616_v35, %v2752_v34  ;;  %v1588_v23 = vand.u32 2147483647, %v2831_v46  ;;  %v1590_v42 = vand.u32 2147483648, %v2831_v46 }
 0x271   :  { %v1846_v27 = vclamps-f32 %v1513_v59, 1.0  ;;  %v1534_v44 = vadd.f32 0.112945676, %v1533_v11  ;;  %v1915_v9 = vpop.eup %1914  ;;  %v1651_v19 = vmul.f32 %v1650_v58, %v2825_v25  ;;  %v1641_v32 = vadd.f32 0.0036580483, %v1640_v8 }
 0x272   :  { %v1676_v3 = vadd.f32 1.0, %v1845_v61  ;;  %v1580_v24 = vmul.f32 %v1915_v9, %v2831_v46  ;;  %v2847_v56 = vadd.f32 1.0, %v1617_v37  ;;  %vm1585_vm8 = vweird.f32 %v1915_v9 }
 0x273   :  { %v1677_v41 = vadd.f32 1.0, %v1846_v27  ;;  %v1535_v33 = vmul.f32 %v1534_v44, %v2787_v6  ;;  %v1652_v15 = vadd.f32 0.014752088, %v1651_v19  ;;  %vm1584_vm9 = vweird.f32 %v2831_v46 }
 0x274   :  { %v1682_v28 = vmul.f32 %v1676_v3, %v1424_v60  ;;  %v1581_v30 = vsub.f32 1.0, %v1580_v24  ;;  %1916 = vrcp.f32 %v2847_v56  ;;  %v1568_v49 = vmul.f32 %v1567_v18, %v2733_v2  ;;  %vm1586_vm10 = vmor %vm1584_vm9, %vm1585_vm8 }
 0x275   :  { %v1683_v14 = vmul.f32 %v1677_v41, %v1425_v36  ;;  %v1536_v16 = vadd.f32 0.4994258, %v1535_v33  ;;  %v1653_v13 = vmul.f32 %v1652_v15, %v2825_v25  ;;  %v1606_v59 = vmul.f32 %v1605_v51, %v2752_v34 }
 0x276   :  { %1756 = vmatmul.f32.vlgmr.msra.gmra.mxu2 %v1682_v28  ;;  %v1582_v63 = vmul.f32 %v1915_v9, %v1581_v30  ;;  %v1591_v45 = vor.u32 1.1754944e-38, %v1590_v42  ;;  %v1525_v0 = vadd.f32 0.18741608, %v1524_v50  ;;  %vm1589_vm11 = vcmp.eq.f32.partialorder %v1588_v23, 8.507059e+37 }
 0x277   :  { %1779 = vmatmul.f32.vlgmr.msra.gmra.mxu3 %v1683_v14  ;;  %v1537_v55 = vmul.f32 %v1536_v16, %v2787_v6  ;;  %v1642_v62 = vmul.f32 %v1641_v32, %v2825_v25  ;;  %v1654_v27 = vadd.f32 0.112945676, %v1653_v13  ;;  %v1607_v5 = vadd.f32 1.1283791, %v1606_v59 }
 0x278   :  { %v1583_v20 = vadd.f32 %v1915_v9, %v1582_v63  ;;  %v1526_v2 = vmul.f32 %v1525_v0, %v2787_v6  ;;  %v1427_v1 = vmul.f32 0.5, %v2727_v17  ;;  %v1630_v36 = vand.u32 2147483648, %v2847_v56 }
 0x279   :  { %v1538_v48 = vadd.f32 1.0, %v1537_v55  ;;  %v1655_v3 = vmul.f32 %v1654_v27, %v2825_v25  ;;  %v1643_v11 = vadd.f32 0.05243302, %v1642_v62  ;;  %v1628_v26 = vand.u32 2147483647, %v2847_v56 }
 0x27a   :  { %v1587_v61 = vsel %vm1586_vm10, %v1915_v9, %v1583_v20  ;;  %v1917_v57 = vpop.eup %1916  ;;  %v1608_v35 = vmul.f32 %v1607_v5, %v2739_v12  ;;  %v1527_v6 = vadd.f32 1.1283791, %v1526_v2  ;;  %vm1624_vm13 = vweird.f32 %v2847_v56  ;;  %v1885_v5 = vld [vmem:[%s2893_s8] ss:$0 sm:$0xff] }
 0x27b   :  { %1918 = vrcp.f32 %v1538_v48  ;;  %v1592_v60 = vsel %vm1589_vm11, %v1591_v45, %v1587_v61  ;;  %v1620_v53 = vmul.f32 %v1917_v57, %v2847_v56  ;;  %v1656_v41 = vadd.f32 0.4994258, %v1655_v3 }
 0x27c   :  { %v1593_v46 = vmul.f32 %v1592_v60, %v1568_v49  ;;  %vm1625_vm12 = vweird.f32 %v1917_v57  ;;  %v1644_v17 = vmul.f32 %v1643_v11, %v2825_v25  ;;  %v1631_v44 = vor.u32 1.1754944e-38, %v1630_v36 }
 0x27d   :  { %v1621_v21 = vsub.f32 1.0, %v1620_v53  ;;  %v1657_v14 = vmul.f32 %v1656_v41, %v2825_v25  ;;  %vm1626_vm14 = vmor %vm1624_vm13, %vm1625_vm12  ;;  %vm1629_vm15 = vcmp.eq.f32.partialorder %v1628_v26, 8.507059e+37  ;;  %v1548_v37 = vand.u32 2147483647, %v1538_v48 }
 0x27e   :  { %v1848_v34 = vclamps-f32 %v1593_v46, 1.0  ;;  %v1550_v24 = vand.u32 2147483648, %v1538_v48  ;;  %vm1544_vm1 = vweird.f32 %v1538_v48  ;;  %v1645_v8 = vadd.f32 0.18741608, %v1644_v17 }
 0x27f   :  { %v1622_v31 = vmul.f32 %v1917_v57, %v1621_v21  ;;  %v1658_v9 = vadd.f32 1.0, %v1657_v14  ;;  %v1528_v18 = vmul.f32 %v1527_v6, %v2769_v4  ;;  %vm1549_vm3 = vcmp.eq.f32.partialorder %v1548_v37, 8.507059e+37 }
 0x280   :  { %v1679_v28 = vadd.f32 1.0, %v1848_v34  ;;  %v1551_v19 = vor.u32 1.1754944e-38, %v1550_v24  ;;  %v1428_v43 = vmul.f32 0.5, %v2730_v7  ;;  %v1646_v63 = vmul.f32 %v1645_v8, %v2825_v25 }
 0x281   :  { %v1919_v10 = vpop.eup %1918  ;;  %v1623_v22 = vadd.f32 %v1917_v57, %v1622_v31  ;;  %1920 = vrcp.f32 %v1658_v9  ;;  %v1670_v49 = vand.u32 2147483648, %v1658_v9  ;;  %v1668_v45 = vand.u32 2147483647, %v1658_v9 }
 0x282   :  { %v1540_v38 = vmul.f32 %v1919_v10, %v1538_v48  ;;  %v1685_v54 = vmul.f32 %v1679_v28, %v1427_v1  ;;  %vm1545_vm0 = vweird.f32 %v1919_v10  ;;  %v1426_v48 = vmul.f32 0.5, %v2765_v29 }
 0x283   :  { %v1627_v40 = vsel %vm1626_vm14, %v1917_v57, %v1623_v22  ;;  %vm1546_vm2 = vmor %vm1544_vm1, %vm1545_vm0  ;;  %v1647_v4 = vadd.f32 1.1283791, %v1646_v63  ;;  %vm1664_vm5 = vweird.f32 %v1658_v9  ;;  %v1671_v61 = vor.u32 1.1754944e-38, %v1670_v49 }
 0x284   :  { %v1541_v58 = vsub.f32 1.0, %v1540_v38  ;;  %1759 = vmatmul.f32.gmra.mxu2 %v1685_v54  ;;  %v1632_v12 = vsel %vm1629_vm15, %v1631_v44, %v1627_v40  ;;  %vm1669_vm7 = vcmp.eq.f32.partialorder %v1668_v45, 8.507059e+37  ;;  %v1429_v29 = vmul.f32 0.5, %v2789_v52 }
 0x285   :  { %v1633_v33 = vmul.f32 %v1632_v12, %v1608_v35  ;;  %v1648_v25 = vmul.f32 %v1647_v4, %v2801_v39 }
 0x286   :  { %v1542_v47 = vmul.f32 %v1919_v10, %v1541_v58 }
 0x287   :  { %v1849_v56 = vclamps-f32 %v1633_v33, 1.0  ;;  %v1921_v23 = vpop.eup %1920 }
 0x288   :  { %v1543_v51 = vadd.f32 %v1919_v10, %v1542_v47  ;;  %v1660_v15 = vmul.f32 %v1921_v23, %v1658_v9  ;;  %vm1665_vm4 = vweird.f32 %v1921_v23 }
 0x289   :  { %v1680_v16 = vadd.f32 1.0, %v1849_v56  ;;  %vm1666_vm6 = vmor %vm1664_vm5, %vm1665_vm4 }
 0x28a   :  { %v1547_v30 = vsel %vm1546_vm2, %v1919_v10, %v1543_v51  ;;  %v1661_v20 = vsub.f32 1.0, %v1660_v15 }
 0x28b   :  { %v1552_v50 = vsel %vm1549_vm3, %v1551_v19, %v1547_v30  ;;  %v1686_v55 = vmul.f32 %v1680_v16, %v1428_v43 }
 0x28c   :  { %v1553_v42 = vmul.f32 %v1552_v50, %v1528_v18  ;;  %v1662_v59 = vmul.f32 %v1921_v23, %v1661_v20 }
 0x28d   :  { %1782 = vmatmul.f32.gmra.mxu3 %v1686_v55 }
 0x28e   :  { %v1847_v32 = vclamps-f32 %v1553_v42, 1.0  ;;  %v1663_v0 = vadd.f32 %v1921_v23, %v1662_v59 }
 0x290   :  { %v1678_v13 = vadd.f32 1.0, %v1847_v32  ;;  %v1667_v57 = vsel %vm1666_vm6, %v1921_v23, %v1663_v0 }
 0x291   :  { %v1672_v62 = vsel %vm1669_vm7, %v1671_v61, %v1667_v57 }
 0x292   :  { %v1684_v7 = vmul.f32 %v1678_v13, %v1426_v48  ;;  %v1673_v60 = vmul.f32 %v1672_v62, %v1648_v25 }
 0x294   :  { %1802 = vmatmul.f32.vlgmr.msrb.gmra.mxu0 %v1684_v7  ;;  %v1850_v27 = vclamps-f32 %v1673_v60, 1.0 }
 0x296   :  { %v1681_v46 = vadd.f32 1.0, %v1850_v27 }
 0x298   :  { %v1687_v53 = vmul.f32 %v1681_v46, %v1429_v29 }
 0x29a   :  { %1805 = vmatmul.f32.vlgmr.msrb.gmra.mxu1 %v1687_v53 }
 0x2f9   :  { %v1757_v3 = vpop.f32.mrf.mxu2 }
 0x2fa   :  { %v1758_v2 = vadd.f32 %v1885_v5, %v1757_v3  ;;  %v1780_v34 = vpop.f32.mrf.mxu3 }
 0x2fc   :  { %v1781_v21 = vadd.f32 %v1780_v34, %v1758_v2 }
 0x307   :  { %v1760_v11 = vpop.f32.mrf.mxu2 }
 0x308   :  { %v1761_v36 = vadd.f32 %v1885_v5, %v1760_v11 }
 0x310   :  { %v1783_v41 = vpop.f32.mrf.mxu3 }
 0x311   :  { %v1803_v1 = vpop.f32.mrf.mxu0  ;;  %v1784_v52 = vadd.f32 %v1783_v41, %v1761_v36 }
 0x312   :  { %v1804_v39 = vadd.f32 %v1803_v1, %v1781_v21 }
 0x314   :  { %1809 = vst [vmem:[#allocation8] sm:$0xff] %v1804_v39 }
 0x317   :  { %v1806_v10 = vpop.f32.mrf.mxu1 }
 0x318   :  { %v1807_v28 = vadd.f32 %v1806_v10, %v1784_v52 }
 0x31a   :  { %1810 = vst [vmem:[#allocation8 + $0x8] sm:$0xff] %v1807_v28 }
 0x31b   :  { %1823 = dma.vmem_to_hbm [thread:$0]  %s1816_s18, 256, %s1818_s21, [#allocation4], %s2029_s25, %s2029_s25, %s2030_s26  }
 0x31c   :  { %2022 = dma.done.wait [#allocation4], 256  }
 0x31d   :  { %2023 = vsyncadd [#allocation4], 4294967040 }
 0x31e   :  { %1828 = vsyncpa [#allocation3], 1 }
 0x31f   :  { %1829 = vsyncpa [#allocation6], 1 }
 0x320   :  { %1830 = vsyncpa [#allocation4], 1 }

</bundles_post_ra>
